<compile_context>
chip_gen: v5e
topology: v5e:2x2
jax: 0.10.0
libtpu: 0.0.40
codegen_flags: <defaults>
</compile_context>

<pallas_src>
import math

import jax
import jax.numpy as jnp
from jax import lax
from jax.experimental import pallas as pl
from jax.experimental.pallas import tpu as pltpu

LN_EPS = 1e-5
INV_SQRT2 = 1.0 / math.sqrt(2.0)
PAD_TOKENS = 198


def _round_up(n, m):
    return ((n + m - 1) // m) * m


def _vmem_budget_bytes():
    """~85% of this generation's physical VMEM; conservative fallback."""
    try:
        cap = pltpu.get_tpu_info().vmem_capacity_bytes
        return int(cap * 0.85)
    except Exception:
        return 48 * 1024 * 1024  # safe on v5e/v6e/v7x


def feedforward_kernel(x_ref, w1t_ref, b1_ref, w2t_ref, b2_ref, o_ref):
    x = x_ref[...]                                   # (TILE_M, D) float32

    # LayerNorm over the feature (lane) axis; variance via E[x^2] - mean^2 so
    # the two lane reductions are independent.  Affine (gamma/beta) is folded
    # into W1^T / b1 on the host.
    mean = jnp.mean(x, axis=-1, keepdims=True)
    mean_sq = jnp.mean(x * x, axis=-1, keepdims=True)
    var = jnp.maximum(mean_sq - mean * mean, 0.0)
    xn = (x - mean) * lax.rsqrt(var + LN_EPS)

    # NdLinear #1: Linear(D,D) on the feature axis; its scalar Linear(1,1)
    # (a1*h + c1) and the LayerNorm affine are pre-folded into w1t/b1.
    # Operands cast to the (bf16 by default) weight dtype; f32 accumulation.
    h = jnp.dot(xn.astype(w1t_ref.dtype), w1t_ref[...],
                preferred_element_type=jnp.float32) + b1_ref[...]

    # Exact GELU (nn.GELU default, erf form) in f32.
    h = 0.5 * h * (1.0 + lax.erf(h * INV_SQRT2))

    # dropout1 / dropout2 are identity (p=0.0).
    # TODO(synk): training-mode dropout with p>0 not implemented (module default p=0.0).

    # NdLinear #2 (scalar affine a2/c2 pre-folded into w2t/b2).
    y = jnp.dot(h.astype(w2t_ref.dtype), w2t_ref[...],
                preferred_element_type=jnp.float32) + b2_ref[...]

    o_ref[...] = y.astype(o_ref.dtype)


def feedforward(x, params, *, tile_m=512, weight_dtype=jnp.bfloat16):
    """x: (B, S, D) float32. Returns (B, max(S, 198), D) float32."""
    B, S, D = x.shape
    S_out = max(S, PAD_TOKENS)
    M = B * S_out

    # ---- one-time host-side parameter folding -------------------------------
    gamma = params["gamma"].astype(jnp.float32)
    beta = params["beta"].astype(jnp.float32)
    a1 = params["a1"].astype(jnp.float32)
    c1 = params["c1"].astype(jnp.float32)
    a2 = params["a2"].astype(jnp.float32)
    c2 = params["c2"].astype(jnp.float32)

    # PyTorch Linear computes x @ W.T; fold the scalar Linear(1,1) (a1,c1)
    # and the LayerNorm affine (gamma,beta) into the first matmul.
    w1t = params["w1"].T.astype(jnp.float32) * a1                 # (D, D)
    b1 = beta @ w1t + params["b1"].astype(jnp.float32) * a1 + c1  # (D,)
    w1t = gamma[:, None] * w1t                                    # scale input rows
    w2t = params["w2"].T.astype(jnp.float32) * a2                 # (D, D)
    b2 = params["b2"].astype(jnp.float32) * a2 + c2               # (D,)

    w1t = w1t.astype(weight_dtype)
    w2t = w2t.astype(weight_dtype)
    b1 = b1.reshape(1, D)   # biases stay f32 (added to the f32 accumulator)
    b2 = b2.reshape(1, D)

    # ---- tile size: 8-aligned, >= 2 grid steps when possible (v7x megacore) --
    tm = min(tile_m, _round_up(-(-M // 2), 8))
    tm = max(tm, 8)

    # ---- single pad: token axis padded so B*S_pad is a multiple of tm -------
    # (covers both the 198-token zero pad and the M-axis alignment pad)
    step = tm // math.gcd(B, tm)
    S_pad = _round_up(S_out, step)
    M_pad = B * S_pad
    assert M_pad % tm == 0
    xp = x
    if S_pad > S:
        xp = jnp.pad(x, ((0, 0), (0, S_pad - S), (0, 0)))
    xf = xp.reshape(M_pad, D)

    # TODO(synk): for very large D on v7x (64 MiB VMEM), additionally tile the
    # weight/output feature (N) dimension; full (D,D) weight blocks are kept
    # here since they are grid-invariant and single-buffered.
    def _const_spec(shape):
        return pl.BlockSpec(shape, lambda i: (0, 0), pipeline_mode=pl.Buffered(1))

    out = pl.pallas_call(
        feedforward_kernel,
        out_shape=jax.ShapeDtypeStruct((M_pad, D), jnp.float32),
        grid=(M_pad // tm,),
        in_specs=[
            pl.BlockSpec((tm, D), lambda i: (i, 0)),    # activation tile (double-buffered)
            _const_spec((D, D)),                        # W1^T (grid-invariant, 1 buffer)
            _const_spec((1, D)),                        # b1
            _const_spec((D, D)),                        # W2^T
            _const_spec((1, D)),                        # b2
        ],
        out_specs=pl.BlockSpec((tm, D), lambda i: (i, 0)),
        compiler_params=pltpu.CompilerParams(
            dimension_semantics=("parallel",),          # shards M tiles over v7x TCs
            vmem_limit_bytes=_vmem_budget_bytes(),
        ),
    )(xf, w1t, b1, w2t, b2)

    return out.reshape(B, S_pad, D)[:, :S_out, :]


def feedforward_ref(x, params):
    """Pure-JAX reference mirroring the PyTorch forward exactly (unfolded, f32)."""
    B, S, D = x.shape
    if S < PAD_TOKENS:
        x = jnp.concatenate([x, jnp.zeros((B, PAD_TOKENS - S, D), x.dtype)], axis=1)
    mean = jnp.mean(x, axis=-1, keepdims=True)
    var = jnp.mean((x - mean) ** 2, axis=-1, keepdims=True)
    xn = (x - mean) / jnp.sqrt(var + LN_EPS)
    xn = xn * params["gamma"] + params["beta"]
    h = xn @ params["w1"].T + params["b1"]
    h = h * params["a1"] + params["c1"]
    h = 0.5 * h * (1.0 + lax.erf(h * INV_SQRT2))
    y = h @ params["w2"].T + params["b2"]
    y = y * params["a2"] + params["c2"]
    return y


def init_params(key, dim):
    """Deterministic init matching the PyTorch module's parameter shapes."""
    ks = jax.random.split(key, 8)
    bound = 1.0 / math.sqrt(dim)
    u = lambda k, shape, b: jax.random.uniform(k, shape, jnp.float32, -b, b)
    return {
        "gamma": jnp.ones((dim,), jnp.float32),                 # LayerNorm weight
        "beta": jnp.zeros((dim,), jnp.float32),                 # LayerNorm bias
        "w1": u(ks[0], (dim, dim), bound),                      # NdLinear#1 Linear(dim,dim)
        "b1": u(ks[1], (dim,), bound),
        "a1": u(ks[2], (), 1.0),                                # NdLinear#1 Linear(1,1) weight
        "c1": u(ks[3], (), 1.0),                                # NdLinear#1 Linear(1,1) bias
        "w2": u(ks[4], (dim, dim), bound),                      # NdLinear#2 Linear(dim,dim)
        "b2": u(ks[5], (dim,), bound),
        "a2": u(ks[6], (), 1.0),
        "c2": u(ks[7], (), 1.0),
    }


if __name__ == "__main__":
    key = jax.random.PRNGKey(0)
    k_x, k_p = jax.random.split(key)

    B, S, D = 2, 8, 32  # small ViT-like shapes; tokens get padded to 198
    x = jax.random.normal(k_x, (B, S, D), jnp.float32)
    params = init_params(k_p, D)

    ref = jax.block_until_ready(feedforward_ref(x, params))

    # Exactness check: f32 weights, tight tolerance.
    out_f32 = jax.block_until_ready(feedforward(x, params, weight_dtype=jnp.float32))
    assert out_f32.shape == (B, PAD_TOKENS, D), out_f32.shape
    err_f32 = float(jnp.max(jnp.abs(out_f32 - ref)))
    assert jnp.allclose(out_f32, ref, atol=2e-5, rtol=2e-5), err_f32

    # Performance path: bf16 weights (default), looser tolerance vs f32 reference.
    out_bf16 = jax.block_until_ready(feedforward(x, params))
    assert out_bf16.shape == (B, PAD_TOKENS, D), out_bf16.shape
    err_bf16 = float(jnp.max(jnp.abs(out_bf16 - ref)))
    assert jnp.allclose(out_bf16, ref, atol=5e-2, rtol=5e-2), err_bf16

    print("KERNEL_OK")
</pallas_src>

<mosaic_0001>
module attributes {stable_mosaic.version = 11 : i64} {
  func.func @feedforward_kernel(%arg0: i32, %arg1: memref<200x32xf32, #tpu.memory_space<vmem>>, %arg2: memref<32x32xf32, #tpu.memory_space<vmem>>, %arg3: memref<1x32xf32, #tpu.memory_space<vmem>>, %arg4: memref<32x32xf32, #tpu.memory_space<vmem>>, %arg5: memref<1x32xf32, #tpu.memory_space<vmem>>, %arg6: memref<200x32xf32, #tpu.memory_space<vmem>>) attributes {dimension_semantics = [#tpu.dimension_semantics<parallel>], iteration_bounds = array<i64: 2>, scalar_prefetch = 0 : i64, scratch_operands = 0 : i64, tpu.core_type = #tpu.core_type<tc>, window_params = [{transform_indices = @transform_0, window_bounds = array<i64: 200, 32>}, {pipeline_mode = #tpu.pipeline_mode<synchronous>, transform_indices = @transform_1, window_bounds = array<i64: 32, 32>}, {pipeline_mode = #tpu.pipeline_mode<synchronous>, transform_indices = @transform_2, window_bounds = array<i64: 1, 32>}, {pipeline_mode = #tpu.pipeline_mode<synchronous>, transform_indices = @transform_3, window_bounds = array<i64: 32, 32>}, {pipeline_mode = #tpu.pipeline_mode<synchronous>, transform_indices = @transform_4, window_bounds = array<i64: 1, 32>}, {transform_indices = @transform_5, window_bounds = array<i64: 200, 32>}]} {
    %c0 = arith.constant 0 : index
    %c0_0 = arith.constant 0 : index
    %0 = vector.load %arg1[%c0, %c0_0] : memref<200x32xf32, #tpu.memory_space<vmem>>, vector<200x32xf32>
    %cst = arith.constant dense<0.000000e+00> : vector<200xf32>
    %1 = vector.multi_reduction <add>, %0, %cst [1] : vector<200x32xf32> to vector<200xf32>
    %2 = vector.shape_cast %1 : vector<200xf32> to vector<200x1xf32>
    %cst_1 = arith.constant 3.200000e+01 : f32
    %3 = vector.broadcast %cst_1 : f32 to vector<200x1xf32>
    %4 = arith.divf %2, %3 : vector<200x1xf32>
    %5 = arith.mulf %0, %0 : vector<200x32xf32>
    %cst_2 = arith.constant dense<0.000000e+00> : vector<200xf32>
    %6 = vector.multi_reduction <add>, %5, %cst_2 [1] : vector<200x32xf32> to vector<200xf32>
    %7 = vector.shape_cast %6 : vector<200xf32> to vector<200x1xf32>
    %cst_3 = arith.constant 3.200000e+01 : f32
    %8 = vector.broadcast %cst_3 : f32 to vector<200x1xf32>
    %9 = arith.divf %7, %8 : vector<200x1xf32>
    %10 = arith.mulf %4, %4 : vector<200x1xf32>
    %11 = arith.subf %9, %10 : vector<200x1xf32>
    %cst_4 = arith.constant 0.000000e+00 : f32
    %12 = vector.broadcast %cst_4 : f32 to vector<200x1xf32>
    %13 = arith.maximumf %11, %12 : vector<200x1xf32>
    %14 = vector.broadcast %4 : vector<200x1xf32> to vector<200x32xf32>
    %15 = arith.subf %0, %14 : vector<200x32xf32>
    %cst_5 = arith.constant 9.99999974E-6 : f32
    %16 = vector.broadcast %cst_5 : f32 to vector<200x1xf32>
    %17 = arith.addf %13, %16 : vector<200x1xf32>
    %18 = math.rsqrt %17 : vector<200x1xf32>
    %19 = vector.broadcast %18 : vector<200x1xf32> to vector<200x32xf32>
    %20 = arith.mulf %15, %19 : vector<200x32xf32>
    %c0_6 = arith.constant 0 : index
    %c0_7 = arith.constant 0 : index
    %21 = vector.load %arg2[%c0_6, %c0_7] : memref<32x32xf32, #tpu.memory_space<vmem>>, vector<32x32xf32>
    %cst_8 = arith.constant dense<0.000000e+00> : vector<200x32xf32>
    %22 = tpu.matmul %20, %21, %cst_8 {dimension_numbers = #tpu.dot_dimension_numbers<[1], [0], [0], [1], [0, 0, 1, 1], [], []>} : vector<200x32xf32>, vector<32x32xf32>, vector<200x32xf32> -> vector<200x32xf32>
    %c0_9 = arith.constant 0 : index
    %c0_10 = arith.constant 0 : index
    %23 = vector.load %arg3[%c0_9, %c0_10] : memref<1x32xf32, #tpu.memory_space<vmem>>, vector<1x32xf32>
    %24 = vector.broadcast %23 : vector<1x32xf32> to vector<200x32xf32>
    %25 = arith.addf %22, %24 : vector<200x32xf32>
    %cst_11 = arith.constant 5.000000e-01 : f32
    %26 = vector.broadcast %cst_11 : f32 to vector<200x32xf32>
    %27 = arith.mulf %26, %25 : vector<200x32xf32>
    %cst_12 = arith.constant 0.707106769 : f32
    %28 = vector.broadcast %cst_12 : f32 to vector<200x32xf32>
    %29 = arith.mulf %25, %28 : vector<200x32xf32>
    %30 = math.erf %29 : vector<200x32xf32>
    %cst_13 = arith.constant 1.000000e+00 : f32
    %31 = vector.broadcast %cst_13 : f32 to vector<200x32xf32>
    %32 = arith.addf %31, %30 : vector<200x32xf32>
    %33 = arith.mulf %27, %32 : vector<200x32xf32>
    %c0_14 = arith.constant 0 : index
    %c0_15 = arith.constant 0 : index
    %34 = vector.load %arg4[%c0_14, %c0_15] : memref<32x32xf32, #tpu.memory_space<vmem>>, vector<32x32xf32>
    %cst_16 = arith.constant dense<0.000000e+00> : vector<200x32xf32>
    %35 = tpu.matmul %33, %34, %cst_16 {dimension_numbers = #tpu.dot_dimension_numbers<[1], [0], [0], [1], [0, 0, 1, 1], [], []>} : vector<200x32xf32>, vector<32x32xf32>, vector<200x32xf32> -> vector<200x32xf32>
    %c0_17 = arith.constant 0 : index
    %c0_18 = arith.constant 0 : index
    %36 = vector.load %arg5[%c0_17, %c0_18] : memref<1x32xf32, #tpu.memory_space<vmem>>, vector<1x32xf32>
    %37 = vector.broadcast %36 : vector<1x32xf32> to vector<200x32xf32>
    %38 = arith.addf %35, %37 : vector<200x32xf32>
    %c0_19 = arith.constant 0 : index
    %c0_20 = arith.constant 0 : index
    %39 = vector.load %arg6[%c0_19, %c0_20] : memref<200x32xf32, #tpu.memory_space<vmem>>, vector<200x32xf32>
    tpu.vector_store %arg6[%c0_19, %c0_20], %38 {strides = array<i32>} : memref<200x32xf32, #tpu.memory_space<vmem>>, vector<200x32xf32>,
    return
  }
  func.func @transform_0(%arg0: i32) -> (i32, i32) {
    %c0_i32 = arith.constant 0 : i32
    %c0_i32_0 = arith.constant 0 : i32
    return %arg0, %c0_i32 : i32, i32
  }
  func.func @transform_1(%arg0: i32) -> (i32, i32) {
    %c0_i32 = arith.constant 0 : i32
    %c0_i32_0 = arith.constant 0 : i32
    %c0_i32_1 = arith.constant 0 : i32
    return %c0_i32, %c0_i32_0 : i32, i32
  }
  func.func @transform_2(%arg0: i32) -> (i32, i32) {
    %c0_i32 = arith.constant 0 : i32
    %c0_i32_0 = arith.constant 0 : i32
    %c0_i32_1 = arith.constant 0 : i32
    return %c0_i32, %c0_i32_0 : i32, i32
  }
  func.func @transform_3(%arg0: i32) -> (i32, i32) {
    %c0_i32 = arith.constant 0 : i32
    %c0_i32_0 = arith.constant 0 : i32
    %c0_i32_1 = arith.constant 0 : i32
    return %c0_i32, %c0_i32_0 : i32, i32
  }
  func.func @transform_4(%arg0: i32) -> (i32, i32) {
    %c0_i32 = arith.constant 0 : i32
    %c0_i32_0 = arith.constant 0 : i32
    %c0_i32_1 = arith.constant 0 : i32
    return %c0_i32, %c0_i32_0 : i32, i32
  }
  func.func @transform_5(%arg0: i32) -> (i32, i32) {
    %c0_i32 = arith.constant 0 : i32
    %c0_i32_0 = arith.constant 0 : i32
    return %arg0, %c0_i32 : i32, i32
  }
}

</mosaic_0001>

<bundles_post_ra>
// kernel: tpu_custom_call.1
= control target key start
LH: loop header
LB: loop body
LE: loop exit
PB: predicated region body
PF: predicated region fallthrough
CT: control target
= control target key end

     0   :  { %s2669_s18 = smov 0   ;;  %s4813_s0 = inlined_call_operand.vmem [shape: f32[400,32], index: 0, kind: input, shape index: {}]   ;;  %s4814_s1 = inlined_call_operand.vmem [shape: f32[32,32], index: 1, kind: input, shape index: {}]   ;;  %s4815_s2 = inlined_call_operand.vmem [shape: f32[1,32], index: 2, kind: input, shape index: {}]   ;;  %s4816_s3 = inlined_call_operand.vmem [shape: f32[32,32], index: 3, kind: input, shape index: {}]   ;;  %s4817_s4 = inlined_call_operand.vmem [shape: f32[1,32], index: 4, kind: input, shape index: {}]   ;;  %s4818_s5 = inlined_call_operand.vmem [shape: f32[400,32], index: 5, kind: output, shape index: {}]  }
   0x1 LB: > { %s2417_s19 = sadd.s32 4294967295, %s2636_s18   ;;  %p2421_p0 = scmp.ge.s32.totalorder %s2636_s18, 1  ;;  %s2636_s18 = sphi %s2669_s18, %s15_s18  }
   0x2   : > { %p188_p1 = scmp.lt.s32.totalorder %s2636_s18, 3 }
   0x4   : > { %p189_p2 = pnand %p2421_p0, %p188_p1 }
   0x5   : > { %s216_s20 = smul.u32 (!%p189_p2), 25, %s2417_s19 }
   0x6   : > { %192 = sbr.rel (%p189_p2) target bundleno = 723 (0x2d3), region = 40 }
   0x7   : > { %p217_p3 = scmp.lt.s32.totalorder (!%p189_p2), %s216_s20, 49 }
   0xb   : > { %s4902_s20 = smov (!%p217_p3, %s216_s20), 49  ;;  %vm253_vm0 = vcmask 261120  }
   0xc   : > { %s2422_s21 = sshll.u32 %s4902_s20, 3 }
   0xd   : > { %s2685_s24 = scalar_lea.vmem %s4813_s0, %s2422_s21  ;;  %s4716_s27 = scalar_lea.vmem %s4818_s5, %s2422_s21 }
   0xe   : > { %v2688_v0 = vld [vmem:[%s2685_s24 + $0x70] sm:$0xff]  ;;  %v2691_v1 = vld [vmem:[%s2685_s24 + $0x68] sm:$0xff]  ;;  %v2694_v2 = vld [vmem:[%s2685_s24] sm:$0xff] }
   0xf   : > { %v296_v3 = vsel %vm253_vm0, %v2688_v0, 0.0  ;;  %v293_v4 = vsel %vm253_vm0, %v2691_v1, 0.0  ;;  %v254_v5 = vsel %vm253_vm0, %v2694_v2, 0.0  ;;  %v375_v6 = vmul.f32 %v2688_v0, %v2688_v0  ;;  %v2712_v12 = vld [vmem:[%s2685_s24 + $0x8] sm:$0xff]  ;;  %v2717_v14 = vld [vmem:[%s2685_s24 + $0x78] sm:$0xff]  ;;  %v2725_v18 = vld [vmem:[%s2685_s24 + $0x10] sm:$0xff] }
  0x10   : > { %297 = vadd.xlane.f32.xlu2 %v296_v3  ;;  %294 = vadd.xlane.f32.xlu0 %v293_v4  ;;  %v374_v7 = vmul.f32 %v2691_v1, %v2691_v1  ;;  %v361_v8 = vmul.f32 %v2694_v2, %v2694_v2  ;;  %v362_v13 = vmul.f32 %v2712_v12, %v2712_v12  ;;  %v257_v15 = vsel %vm253_vm0, %v2712_v12, 0.0  ;;  %v2736_v24 = vld [vmem:[%s2685_s24 + $0x80] sm:$0xff]  ;;  %v2741_v26 = vld [vmem:[%s2685_s24 + $0x18] sm:$0xff]  ;;  %v2749_v30 = vld [vmem:[%s2685_s24 + $0x88] sm:$0xff] }
  0x11   : > { %255 = vadd.xlane.f32.xlu1 %v254_v5  ;;  %v428_v9 = vsel %vm253_vm0, %v375_v6, 0.0  ;;  %v299_v16 = vsel %vm253_vm0, %v2717_v14, 0.0  ;;  %v376_v19 = vmul.f32 %v2717_v14, %v2717_v14  ;;  %v363_v20 = vmul.f32 %v2725_v18, %v2725_v18  ;;  %v2760_v36 = vld [vmem:[%s2685_s24 + $0x20] sm:$0xff]  ;;  %v2765_v38 = vld [vmem:[%s2685_s24 + $0x90] sm:$0xff]  ;;  %v2773_v42 = vld [vmem:[%s2685_s24 + $0x28] sm:$0xff] }
  0x12   : > { %v425_v10 = vsel %vm253_vm0, %v374_v7, 0.0  ;;  %v386_v11 = vsel %vm253_vm0, %v361_v8, 0.0  ;;  %v389_v17 = vsel %vm253_vm0, %v362_v13, 0.0  ;;  %v260_v23 = vsel %vm253_vm0, %v2725_v18, 0.0  ;;  %v2784_v48 = vld [vmem:[%s2685_s24 + $0x98] sm:$0xff]  ;;  %v2789_v50 = vld [vmem:[%s2685_s24 + $0x30] sm:$0xff] }
  0x13   : > { %v431_v21 = vsel %vm253_vm0, %v376_v19, 0.0  ;;  %v392_v22 = vsel %vm253_vm0, %v363_v20, 0.0  ;;  %v377_v25 = vmul.f32 %v2736_v24, %v2736_v24  ;;  %v302_v27 = vsel %vm253_vm0, %v2736_v24, 0.0  ;;  %v2797_v54 = vld [vmem:[%s2685_s24 + $0xa0] sm:$0xff]  ;;  %v2808_v60 = vld [vmem:[%s2685_s24 + $0x38] sm:$0xff]  ;;  %v2813_v62 = vld [vmem:[%s2685_s24 + $0xa8] sm:$0xff] }
  0x14   : > { %v263_v28 = vsel %vm253_vm0, %v2741_v26, 0.0  ;;  %v364_v31 = vmul.f32 %v2741_v26, %v2741_v26  ;;  %v378_v32 = vmul.f32 %v2749_v30, %v2749_v30  ;;  %v305_v35 = vsel %vm253_vm0, %v2749_v30, 0.0  ;;  %v2821_v5 = vld [vmem:[%s2685_s24 + $0x40] sm:$0xff] }
  0x15   : > { %v434_v29 = vsel %vm253_vm0, %v377_v25, 0.0  ;;  %v365_v37 = vmul.f32 %v2760_v36, %v2760_v36  ;;  %v266_v39 = vsel %vm253_vm0, %v2760_v36, 0.0  ;;  %v308_v40 = vsel %vm253_vm0, %v2765_v38, 0.0 }
  0x16   : > { %v395_v33 = vsel %vm253_vm0, %v364_v31, 0.0  ;;  %v437_v34 = vsel %vm253_vm0, %v378_v32, 0.0  ;;  %v379_v43 = vmul.f32 %v2765_v38, %v2765_v38  ;;  %v366_v44 = vmul.f32 %v2773_v42, %v2773_v42  ;;  %v238_v32 = vld [vmem:[%s2685_s24 + $0x50] sm:$0xff] }
  0x17   : > { %v398_v41 = vsel %vm253_vm0, %v365_v37, 0.0  ;;  %v269_v47 = vsel %vm253_vm0, %v2773_v42, 0.0  ;;  %v380_v49 = vmul.f32 %v2784_v48, %v2784_v48  ;;  %v311_v51 = vsel %vm253_vm0, %v2784_v48, 0.0 }
  0x18   : > { %429 = vadd.xlane.f32.xlu2 %v428_v9  ;;  %426 = vadd.xlane.f32.xlu0 %v425_v10  ;;  %v440_v45 = vsel %vm253_vm0, %v379_v43, 0.0  ;;  %v401_v46 = vsel %vm253_vm0, %v366_v44, 0.0  ;;  %v272_v52 = vsel %vm253_vm0, %v2789_v50, 0.0  ;;  %v367_v55 = vmul.f32 %v2789_v50, %v2789_v50  ;;  %v239_v43 = vld [vmem:[%s2685_s24 + $0x58] sm:$0xff] }
  0x19   : > { %387 = vadd.xlane.f32.xlu1 %v386_v11  ;;  %v443_v53 = vsel %vm253_vm0, %v380_v49, 0.0  ;;  %v381_v56 = vmul.f32 %v2797_v54, %v2797_v54  ;;  %v314_v59 = vsel %vm253_vm0, %v2797_v54, 0.0  ;;  %v368_v61 = vmul.f32 %v2808_v60, %v2808_v60  ;;  %v250_v11 = vld [vmem:[%s2685_s24 + $0xb0] sm:$0xff] }
  0x1a   : > { %v404_v57 = vsel %vm253_vm0, %v367_v55, 0.0  ;;  %v275_v63 = vsel %vm253_vm0, %v2808_v60, 0.0  ;;  %v317_v3 = vsel %vm253_vm0, %v2813_v62, 0.0  ;;  %v382_v6 = vmul.f32 %v2813_v62, %v2813_v62 }
  0x1b   : > { %v446_v58 = vsel %vm253_vm0, %v381_v56, 0.0  ;;  %v407_v4 = vsel %vm253_vm0, %v368_v61, 0.0  ;;  %v369_v7 = vmul.f32 %v2821_v5, %v2821_v5  ;;  %v278_v10 = vsel %vm253_vm0, %v2821_v5, 0.0  ;;  %v240_v61 = vld [vmem:[%s2685_s24 + $0x60] sm:$0xff] }
  0x1c   : > { %v449_v8 = vsel %vm253_vm0, %v382_v6, 0.0  ;;  %v383_v13 = vmul.f32 %v250_v11, %v250_v11  ;;  %v284_v37 = vsel %vm253_vm0, %v238_v32, 0.0 }
  0x1d   : > { %v410_v9 = vsel %vm253_vm0, %v369_v7, 0.0  ;;  %v373_v7 = vmul.f32 %v240_v61, %v240_v61 }
  0x1e   : > { %v452_v20 = vsel %vm253_vm0, %v383_v13, 0.0 }
  0x20   : > { %258 = vadd.xlane.f32.xlu0 %v257_v15  ;;  %300 = vadd.xlane.f32.xlu2 %v299_v16  ;;  %v237_v15 = vld [vmem:[%s2685_s24 + $0x48] sm:$0xff]  ;;  %v2638_v16 = vmov 32.0  }
  0x21   : > { %390 = vadd.xlane.f32.xlu1 %v389_v17  ;;  %2520 = vrcp.f32 %v2638_v16  ;;  %v320_v17 = vsel %vm253_vm0, %v250_v11, 0.0  ;;  %v281_v19 = vsel %vm253_vm0, %v237_v15, 0.0 }
  0x27   : > { %v2521_v25 = vpop.eup %2520 }
  0x28   : > { %432 = vadd.xlane.f32.xlu0 %v431_v21  ;;  %393 = vadd.xlane.f32.xlu2 %v392_v22  ;;  %v251_v21 = vld [vmem:[%s2685_s24 + $0xb8] sm:$0xff]  ;;  %v370_v22 = vmul.f32 %v237_v15, %v237_v15  ;;  %vm334_vm1 = vweird.f32 %v2521_v25 }
  0x29   : > { %261 = vadd.xlane.f32.xlu1 %v260_v23  ;;  %v384_v23 = vmul.f32 %v251_v21, %v251_v21  ;;  %v323_v31 = vsel %vm253_vm0, %v251_v21, 0.0 }
  0x30   : > { %303 = vadd.xlane.f32.xlu0 %v302_v27  ;;  %264 = vadd.xlane.f32.xlu2 %v263_v28  ;;  %v413_v27 = vsel %vm253_vm0, %v370_v22, 0.0  ;;  %v455_v28 = vsel %vm253_vm0, %v384_v23, 0.0  ;;  %v422_v23 = vsel %vm253_vm0, %v373_v7, 0.0 }
  0x31   : > { %435 = vadd.xlane.f32.xlu1 %v434_v29  ;;  %v330_v29 = vmul.f32 32.0, %v2521_v25 }
  0x38   : > { %396 = vadd.xlane.f32.xlu0 %v395_v33  ;;  %438 = vadd.xlane.f32.xlu2 %v437_v34  ;;  %v331_v33 = vsub.f32 1.0, %v330_v29  ;;  %v371_v34 = vmul.f32 %v238_v32, %v238_v32 }
  0x39   : > { %306 = vadd.xlane.f32.xlu1 %v305_v35  ;;  %v252_v35 = vld [vmem:[%s2685_s24 + $0xc0] sm:$0xff] }
  0x40   : > { %267 = vadd.xlane.f32.xlu0 %v266_v39  ;;  %309 = vadd.xlane.f32.xlu2 %v308_v40  ;;  %v326_v39 = vsel %vm253_vm0, %v252_v35, 0.0  ;;  %v332_v40 = vmul.f32 %v2521_v25, %v331_v33 }
  0x41   : > { %399 = vadd.xlane.f32.xlu1 %v398_v41  ;;  %v416_v41 = vsel %vm253_vm0, %v371_v34, 0.0 }
  0x42   : > { %v333_v44 = vadd.f32 %v2521_v25, %v332_v40 }
  0x44   : > { %v2852_v55 = vsel %vm334_vm1, %v2521_v25, %v333_v44 }
  0x48   : > { %441 = vadd.xlane.f32.xlu0 %v440_v45  ;;  %402 = vadd.xlane.f32.xlu2 %v401_v46  ;;  %v385_v45 = vmul.f32 %v252_v35, %v252_v35  ;;  %v372_v46 = vmul.f32 %v239_v43, %v239_v43 }
  0x49   : > { %270 = vadd.xlane.f32.xlu1 %v269_v47  ;;  %v889_v47 = vld [vmem:[%s4814_s1 + $0x18] sm:$0xff] }
  0x4a   : > { %981 = vmatpush.msra.mxu0 %v889_v47  ;;  %2501 = vmatpush.msra.mxu2 %v889_v47  ;;  %v458_v56 = vsel %vm253_vm0, %v385_v45, 0.0 }
  0x50   : > { %312 = vadd.xlane.f32.xlu0 %v311_v51  ;;  %273 = vadd.xlane.f32.xlu2 %v272_v52 }
  0x51   : > { %444 = vadd.xlane.f32.xlu1 %v443_v53  ;;  %v888_v53 = vld [vmem:[%s4814_s1 + $0x10] sm:$0xff] }
  0x52   : > { %982 = vmatpush.msra.mxu0 %v888_v53  ;;  %2502 = vmatpush.msra.mxu2 %v888_v53 }
  0x58   : > { %405 = vadd.xlane.f32.xlu0 %v404_v57  ;;  %447 = vadd.xlane.f32.xlu2 %v446_v58  ;;  %v419_v57 = vsel %vm253_vm0, %v372_v46, 0.0  ;;  %v287_v58 = vsel %vm253_vm0, %v239_v43, 0.0 }
  0x59   : > { %315 = vadd.xlane.f32.xlu1 %v314_v59  ;;  %v887_v59 = vld [vmem:[%s4814_s1 + $0x8] sm:$0xff] }
  0x5a   : > { %983 = vmatpush.msra.mxu0 %v887_v59  ;;  %2503 = vmatpush.msra.mxu2 %v887_v59 }
  0x60   : > { %276 = vadd.xlane.f32.xlu0 %v275_v63  ;;  %318 = vadd.xlane.f32.xlu2 %v317_v3 }
  0x61   : > { %408 = vadd.xlane.f32.xlu1 %v407_v4  ;;  %v886_v4 = vld [vmem:[%s4814_s1] sm:$0xff] }
  0x62   : > { %984 = vmatpush.msra.mxu0 %v886_v4  ;;  %2504 = vmatpush.msra.mxu2 %v886_v4 }
  0x68   : > { %450 = vadd.xlane.f32.xlu0 %v449_v8  ;;  %411 = vadd.xlane.f32.xlu2 %v410_v9 }
  0x69   : > { %279 = vadd.xlane.f32.xlu1 %v278_v10 }
  0x70   : > { %321 = vadd.xlane.f32.xlu0 %v320_v17  ;;  %282 = vadd.xlane.f32.xlu2 %v281_v19 }
  0x71   : > { %453 = vadd.xlane.f32.xlu1 %v452_v20  ;;  %v290_v20 = vsel %vm253_vm0, %v240_v61, 0.0 }
  0x78   : > { %414 = vadd.xlane.f32.xlu0 %v413_v27  ;;  %456 = vadd.xlane.f32.xlu2 %v455_v28 }
  0x79   : > { %324 = vadd.xlane.f32.xlu1 %v323_v31 }
  0x80   : > { %285 = vadd.xlane.f32.xlu0 %v284_v37  ;;  %327 = vadd.xlane.f32.xlu2 %v326_v39 }
  0x81   : > { %417 = vadd.xlane.f32.xlu1 %v416_v41 }
  0x83   : > { %v298_v49 = vpop.xlane.xlu2 %297  ;;  %v295_v51 = vpop.xlane.xlu0 %294 }
  0x84   : > { %v256_v52 = vpop.xlane.xlu1 %255  ;;  %v2862_v63 = vmul.f32 %v2852_v55, %v298_v49  ;;  %v2865_v3 = vmul.f32 %v2852_v55, %v295_v51 }
  0x85   : > { %v2871_v6 = vmul.f32 %v2852_v55, %v256_v52 }
  0x86   : > { %v500_v10 = vmul.f32 %v2862_v63, %v2862_v63  ;;  %v499_v11 = vmul.f32 %v2865_v3, %v2865_v3 }
  0x87   : > { %v486_v17 = vmul.f32 %v2871_v6, %v2871_v6 }
  0x88   : > { %459 = vadd.xlane.f32.xlu0 %v458_v56  ;;  %420 = vadd.xlane.f32.xlu2 %v419_v57 }
  0x89   : > { %288 = vadd.xlane.f32.xlu1 %v287_v58 }
  0x8b   : > { %v430_v8 = vpop.xlane.xlu2 %429  ;;  %v427_v9 = vpop.xlane.xlu0 %426 }
  0x8c   : > { %v475_v13 = vmul.f32 %v430_v8, %v2852_v55  ;;  %v474_v15 = vmul.f32 %v427_v9, %v2852_v55  ;;  %v388_v16 = vpop.xlane.xlu1 %387 }
  0x8d   : > { %v461_v19 = vmul.f32 %v388_v16, %v2852_v55 }
  0x8e   : > { %v525_v21 = vsub.f32 %v475_v13, %v500_v10  ;;  %v524_v22 = vsub.f32 %v474_v15, %v499_v11 }
  0x8f   : > { %v511_v25 = vsub.f32 %v461_v19, %v486_v17 }
  0x90   : > { %v550_v27 = vmax.f32 %v525_v21, 0.0  ;;  %v549_v28 = vmax.f32 %v524_v22, 0.0  ;;  %291 = vadd.xlane.f32.xlu0 %v290_v20 }
  0x91   : > { %v536_v29 = vmax.f32 %v511_v25, 0.0  ;;  %423 = vadd.xlane.f32.xlu1 %v422_v23 }
  0x92   : > { %v2884_v31 = vadd.f32 1e-05, %v550_v27  ;;  %v2886_v32 = vadd.f32 1e-05, %v549_v28 }
  0x93   : > { %v586_v33 = vadd.f32 1e-05, %v536_v29  ;;  %v259_v34 = vpop.xlane.xlu0 %258  ;;  %v301_v35 = vpop.xlane.xlu2 %300 }
  0x94   : > { %2522 = vrsqrt.f32 %v2884_v31  ;;  %v2890_v37 = vmul.f32 %v2852_v55, %v259_v34  ;;  %v391_v39 = vpop.xlane.xlu1 %390  ;;  %v2897_v44 = vmul.f32 %v2852_v55, %v301_v35  ;;  %vm747_vm4 = vweird.f32 %v2886_v32 }
  0x95   : > { %2524 = vrsqrt.f32 %v2886_v32  ;;  %v462_v40 = vmul.f32 %v391_v39, %v2852_v55  ;;  %vm617_vm3 = vweird.f32 %v586_v33  ;;  %vm757_vm7 = vweird.f32 %v2884_v31 }
  0x96   : > { %2526 = vrsqrt.f32 %v586_v33  ;;  %v487_v41 = vmul.f32 %v2890_v37, %v2890_v37  ;;  %v501_v58 = vmul.f32 %v2897_v44, %v2897_v44 }
  0x98   : > { %v512_v43 = vsub.f32 %v462_v40, %v487_v41 }
  0x9a   : > { %v2899_v45 = vpop.eup %2522  ;;  %v537_v46 = vmax.f32 %v512_v43, 0.0 }
  0x9b   : > { %v2901_v47 = vpop.eup %2524  ;;  %v752_v49 = vmul.f32 %v2899_v45, %v2884_v31  ;;  %v433_v51 = vpop.xlane.xlu0 %432  ;;  %vm758_vm10 = vweird.f32 %v2899_v45 }
  0x9c   : > { %v394_v52 = vpop.xlane.xlu2 %393  ;;  %v2527_v53 = vpop.eup %2526  ;;  %v742_v56 = vmul.f32 %v2901_v47, %v2886_v32  ;;  %v2907_v57 = vadd.f32 1e-05, %v537_v46  ;;  %v476_v59 = vmul.f32 %v433_v51, %v2852_v55  ;;  %vm748_vm6 = vweird.f32 %v2901_v47  ;;  %vm759_vm13 = vmor %vm757_vm7, %vm758_vm10 }
  0x9d   : > { %v262_v61 = vpop.xlane.xlu1 %261  ;;  %v612_v4 = vmul.f32 %v2527_v53, %v586_v33  ;;  %v463_v8 = vmul.f32 %v394_v52, %v2852_v55  ;;  %v753_v11 = vmul.f32 %v2899_v45, %v752_v49  ;;  %vm618_vm2 = vweird.f32 %v2527_v53  ;;  %vm749_vm8 = vmor %vm747_vm4, %vm748_vm6 }
  0x9e   : > { %v2913_v7 = vmul.f32 %v2852_v55, %v262_v61  ;;  %v743_v9 = vmul.f32 %v2901_v47, %v742_v56  ;;  %2528 = vrsqrt.f32 %v2907_v57  ;;  %v526_v10 = vsub.f32 %v476_v59, %v501_v58  ;;  %vm619_vm5 = vmor %vm617_vm3, %vm618_vm2 }
  0x9f   : > { %v613_v13 = vmul.f32 %v2527_v53, %v612_v4  ;;  %v754_v22 = vmul.f32 0.5, %v753_v11  ;;  %v561_v49 = vsub.f32 %v2694_v2, %v2871_v6  ;;  %v574_v6 = vsub.f32 %v2691_v1, %v2865_v3 }
  0xa0   : > { %v488_v15 = vmul.f32 %v2913_v7, %v2913_v7  ;;  %v744_v16 = vmul.f32 0.5, %v743_v9  ;;  %v551_v17 = vmax.f32 %v526_v10, 0.0  ;;  %vm627_vm9 = vweird.f32 %v2907_v57 }
  0xa1   : > { %v614_v19 = vmul.f32 0.5, %v613_v13  ;;  %v755_v51 = vsub.f32 1.5, %v754_v22 }
  0xa2   : > { %v513_v20 = vsub.f32 %v463_v8, %v488_v15  ;;  %v2921_v21 = vadd.f32 1e-05, %v551_v17  ;;  %v745_v34 = vsub.f32 1.5, %v744_v16 }
  0xa3   : > { %v615_v23 = vsub.f32 1.5, %v614_v19  ;;  %v304_v27 = vpop.xlane.xlu0 %303 }
  0xa4   : > { %v538_v25 = vmax.f32 %v513_v20, 0.0  ;;  %v265_v28 = vpop.xlane.xlu2 %264  ;;  %v2923_v29 = vpop.eup %2528  ;;  %2530 = vrsqrt.f32 %v2921_v21  ;;  %v2927_v35 = vmul.f32 %v2852_v55, %v304_v27  ;;  %v746_v2 = vmul.f32 %v2901_v47, %v745_v34 }
  0xa5   : > { %v436_v39 = vpop.xlane.xlu1 %435  ;;  %v622_v40 = vmul.f32 %v2923_v29, %v2907_v57  ;;  %v616_v46 = vmul.f32 %v2527_v53, %v615_v23  ;;  %v2943_v59 = vmul.f32 %v2852_v55, %v265_v28  ;;  %vm628_vm11 = vweird.f32 %v2923_v29 }
  0xa6   : > { %v2931_v41 = vadd.f32 1e-05, %v538_v25  ;;  %v477_v43 = vmul.f32 %v436_v39, %v2852_v55  ;;  %v502_v33 = vmul.f32 %v2927_v35, %v2927_v35  ;;  %v750_v9 = vsel %vm749_vm8, %v2901_v47, %v746_v2  ;;  %vm629_vm12 = vmor %vm627_vm9, %vm628_vm11 }
  0xa7   : > { %v623_v52 = vmul.f32 %v2923_v29, %v622_v40  ;;  %v620_v56 = vsel %vm619_vm5, %v2527_v53, %v616_v46  ;;  %v874_v3 = vmul.f32 %v750_v9, %v574_v6  ;;  %v489_v15 = vmul.f32 %v2943_v59, %v2943_v59 }
  0xa8   : > { %2532 = vrsqrt.f32 %v2931_v41  ;;  %v527_v58 = vsub.f32 %v477_v43, %v502_v33  ;;  %v861_v61 = vmul.f32 %v620_v56, %v561_v49  ;;  %v756_v47 = vmul.f32 %v2899_v45, %v755_v51 }
  0xa9   : > { %v624_v4 = vmul.f32 0.5, %v623_v52  ;;  %2437 = vmatmul.msk.f32.vlgmr.msra.gmra.mxu2 %vm253_vm0, %v874_v3  ;;  %v562_v27 = vsub.f32 %v2712_v12, %v2890_v37  ;;  %v575_v57 = vsub.f32 %v2688_v0, %v2862_v63  ;;  %vm767_vm15 = vweird.f32 %v2921_v21 }
  0xaa   : > { %v2951_v8 = vpop.eup %2530  ;;  %v552_v53 = vmax.f32 %v527_v58, 0.0  ;;  %2424 = vmatmul.msk.f32.vlgmr.msra.gmra.mxu0 %vm253_vm0, %v861_v61  ;;  %v760_v46 = vsel %vm759_vm13, %v2899_v45, %v756_v47  ;;  %vm637_vm3 = vweird.f32 %v2931_v41 }
  0xab   : > { %v625_v10 = vsub.f32 1.5, %v624_v4  ;;  %v762_v1 = vmul.f32 %v2951_v8, %v2921_v21  ;;  %v397_v11 = vpop.xlane.xlu0 %396  ;;  %vm768_vm14 = vweird.f32 %v2951_v8 }
  0xac   : > { %v439_v13 = vpop.xlane.xlu2 %438  ;;  %v2960_v32 = vadd.f32 1e-05, %v552_v53  ;;  %v464_v16 = vmul.f32 %v397_v11, %v2852_v55  ;;  %vm769_vm2 = vmor %vm767_vm15, %vm768_vm14  ;;  %v576_v11 = vsub.f32 %v2717_v14, %v2897_v44 }
  0xad   : > { %v307_v17 = vpop.xlane.xlu1 %306  ;;  %v763_v20 = vmul.f32 %v2951_v8, %v762_v1  ;;  %v478_v23 = vmul.f32 %v439_v13, %v2852_v55  ;;  %v626_v25 = vmul.f32 %v2923_v29, %v625_v10  ;;  %v563_v13 = vsub.f32 %v2725_v18, %v2913_v7 }
  0xae   : > { %v2533_v19 = vpop.eup %2532  ;;  %v2969_v22 = vmul.f32 %v2852_v55, %v307_v17  ;;  %2534 = vrsqrt.f32 %v2960_v32  ;;  %v514_v34 = vsub.f32 %v464_v16, %v489_v15  ;;  %vm777_vm6 = vweird.f32 %v2960_v32 }
  0xaf   : > { %v632_v28 = vmul.f32 %v2533_v19, %v2931_v41  ;;  %v764_v39 = vmul.f32 0.5, %v763_v20  ;;  %v630_v12 = vsel %vm629_vm12, %v2923_v29, %v626_v25  ;;  %v875_v29 = vmul.f32 %v760_v46, %v575_v57 }
  0xb0   : > { %v503_v40 = vmul.f32 %v2969_v22, %v2969_v22  ;;  %v539_v43 = vmax.f32 %v514_v34, 0.0  ;;  %v862_v49 = vmul.f32 %v630_v12, %v562_v27  ;;  %vm638_vm1 = vweird.f32 %v2533_v19 }
  0xb1   : > { %v633_v37 = vmul.f32 %v2533_v19, %v632_v28  ;;  %v765_v33 = vsub.f32 1.5, %v764_v39  ;;  %2438 = vmatmul.msk.f32.gmra.mxu2 %vm253_vm0, %v875_v29  ;;  %vm639_vm4 = vmor %vm637_vm3, %vm638_vm1  ;;  %v577_v46 = vsub.f32 %v2736_v24, %v2927_v35 }
  0xb2   : > { %v528_v51 = vsub.f32 %v478_v23, %v503_v40  ;;  %v2991_v56 = vadd.f32 1e-05, %v539_v43  ;;  %2425 = vmatmul.msk.f32.gmra.mxu0 %vm253_vm0, %v862_v49 }
  0xb3   : > { %v634_v52 = vmul.f32 0.5, %v633_v37  ;;  %v268_v58 = vpop.xlane.xlu0 %267  ;;  %v766_v45 = vmul.f32 %v2951_v8, %v765_v33 }
  0xb4   : > { %v553_v31 = vmax.f32 %v528_v51, 0.0  ;;  %v310_v61 = vpop.xlane.xlu2 %309  ;;  %v2535_v2 = vpop.eup %2534  ;;  %2536 = vrsqrt.f32 %v2991_v56  ;;  %v2999_v0 = vmul.f32 %v2852_v55, %v268_v58  ;;  %vm647_vm9 = vweird.f32 %v2991_v56 }
  0xb5   : > { %v635_v6 = vsub.f32 1.5, %v634_v52  ;;  %v400_v63 = vpop.xlane.xlu1 %399  ;;  %v772_v4 = vmul.f32 %v2535_v2, %v2960_v32  ;;  %v770_v1 = vsel %vm769_vm2, %v2951_v8, %v766_v45  ;;  %v3020_v16 = vmul.f32 %v2852_v55, %v310_v61 }
  0xb6   : > { %v3002_v53 = vadd.f32 1e-05, %v553_v31  ;;  %v465_v9 = vmul.f32 %v400_v63, %v2852_v55  ;;  %v490_v10 = vmul.f32 %v2999_v0, %v2999_v0  ;;  %v876_v47 = vmul.f32 %v770_v1, %v576_v11 }
  0xb7   : > { %v636_v3 = vmul.f32 %v2533_v19, %v635_v6  ;;  %v773_v15 = vmul.f32 %v2535_v2, %v772_v4  ;;  %vm778_vm5 = vweird.f32 %v2535_v2  ;;  %v564_v1 = vsub.f32 %v2741_v26, %v2943_v59 }
  0xb8   : > { %2538 = vrsqrt.f32 %v3002_v53  ;;  %v515_v21 = vsub.f32 %v465_v9, %v490_v10  ;;  %vm779_vm7 = vmor %vm777_vm6, %vm778_vm5  ;;  %vm787_vm12 = vweird.f32 %v3002_v53 }
  0xb9   : > { %v640_v41 = vsel %vm639_vm4, %v2533_v19, %v636_v3  ;;  %v774_v17 = vmul.f32 0.5, %v773_v15  ;;  %v504_v19 = vmul.f32 %v3020_v16, %v3020_v16  ;;  %2439 = vmatmul.msk.f32.gmra.mxu2 %vm253_vm0, %v876_v47 }
  0xba   : > { %v863_v20 = vmul.f32 %v640_v41, %v563_v13  ;;  %v3022_v8 = vpop.eup %2536  ;;  %v540_v23 = vmax.f32 %v515_v21, 0.0  ;;  %v578_v21 = vsub.f32 %v2749_v30, %v2969_v22 }
  0xbb   : > { %v775_v25 = vsub.f32 1.5, %v774_v17  ;;  %v642_v14 = vmul.f32 %v3022_v8, %v2991_v56  ;;  %v442_v18 = vpop.xlane.xlu0 %441  ;;  %vm648_vm8 = vweird.f32 %v3022_v8 }
  0xbc   : > { %2426 = vmatmul.msk.f32.gmra.mxu0 %vm253_vm0, %v863_v20  ;;  %v403_v44 = vpop.xlane.xlu2 %402  ;;  %v3028_v7 = vadd.f32 1e-05, %v540_v23  ;;  %v479_v27 = vmul.f32 %v442_v18, %v2852_v55  ;;  %vm649_vm11 = vmor %vm647_vm9, %vm648_vm8 }
  0xbd   : > { %v271_v28 = vpop.xlane.xlu1 %270  ;;  %v643_v39 = vmul.f32 %v3022_v8, %v642_v14  ;;  %v466_v12 = vmul.f32 %v403_v44, %v2852_v55  ;;  %v776_v37 = vmul.f32 %v2535_v2, %v775_v25 }
  0xbe   : > { %v2539_v34 = vpop.eup %2538  ;;  %v3036_v40 = vmul.f32 %v2852_v55, %v271_v28  ;;  %2540 = vrsqrt.f32 %v3028_v7  ;;  %v529_v43 = vsub.f32 %v479_v27, %v504_v19  ;;  %vm657_vm15 = vweird.f32 %v3028_v7 }
  0xbf   : > { %v782_v32 = vmul.f32 %v2539_v34, %v3002_v53  ;;  %v644_v49 = vmul.f32 0.5, %v643_v39  ;;  %v780_v33 = vsel %vm779_vm7, %v2535_v2, %v776_v37  ;;  %vm788_vm10 = vweird.f32 %v2539_v34 }
  0xc0   : > { %v491_v57 = vmul.f32 %v3036_v40, %v3036_v40  ;;  %v554_v52 = vmax.f32 %v529_v43, 0.0  ;;  %v877_v58 = vmul.f32 %v780_v33, %v577_v46  ;;  %vm789_vm13 = vmor %vm787_vm12, %vm788_vm10  ;;  %v565_v43 = vsub.f32 %v2760_v36, %v2999_v0 }
  0xc1   : > { %v783_v51 = vmul.f32 %v2539_v34, %v782_v32  ;;  %v645_v31 = vsub.f32 1.5, %v644_v49 }
  0xc2   : > { %v516_v29 = vsub.f32 %v466_v12, %v491_v57  ;;  %v3046_v45 = vadd.f32 1e-05, %v554_v52  ;;  %2440 = vmatmul.msk.f32.gmra.mxu2 %vm253_vm0, %v877_v58 }
  0xc3   : > { %v784_v61 = vmul.f32 0.5, %v783_v51  ;;  %v313_v63 = vpop.xlane.xlu0 %312  ;;  %v646_v35 = vmul.f32 %v3022_v8, %v645_v31 }
  0xc4   : > { %v541_v6 = vmax.f32 %v516_v29, 0.0  ;;  %v274_v24 = vpop.xlane.xlu2 %273  ;;  %v2541_v4 = vpop.eup %2540  ;;  %2542 = vrsqrt.f32 %v3046_v45  ;;  %v3053_v2 = vmul.f32 %v2852_v55, %v313_v63  ;;  %vm797_vm3 = vweird.f32 %v3046_v45 }
  0xc5   : > { %v785_v9 = vsub.f32 1.5, %v784_v61  ;;  %v445_v10 = vpop.xlane.xlu1 %444  ;;  %v652_v3 = vmul.f32 %v2541_v4, %v3028_v7  ;;  %v650_v26 = vsel %vm649_vm11, %v3022_v8, %v646_v35  ;;  %v3074_v47 = vmul.f32 %v2852_v55, %v274_v24 }
  0xc6   : > { %v3058_v11 = vadd.f32 1e-05, %v541_v6  ;;  %v480_v13 = vmul.f32 %v445_v10, %v2852_v55  ;;  %v505_v15 = vmul.f32 %v3053_v2, %v3053_v2  ;;  %v864_v56 = vmul.f32 %v650_v26, %v564_v1 }
  0xc7   : > { %v786_v59 = vmul.f32 %v2539_v34, %v785_v9  ;;  %v653_v41 = vmul.f32 %v2541_v4, %v652_v3  ;;  %vm658_vm14 = vweird.f32 %v2541_v4  ;;  %v492_v19 = vmul.f32 %v3074_v47, %v3074_v47 }
  0xc8   : > { %2544 = vrsqrt.f32 %v3058_v11  ;;  %v530_v17 = vsub.f32 %v480_v13, %v505_v15  ;;  %2427 = vmatmul.msk.f32.gmra.mxu0 %vm253_vm0, %v864_v56  ;;  %vm659_vm1 = vmor %vm657_vm15, %vm658_vm14  ;;  %v579_v1 = vsub.f32 %v2765_v38, %v3020_v16  ;;  %vm667_vm6 = vweird.f32 %v3058_v11 }
  0xc9   : > { %v790_v20 = vsel %vm789_vm13, %v2539_v34, %v786_v59  ;;  %v654_v53 = vmul.f32 0.5, %v653_v41  ;;  %v566_v38 = vsub.f32 %v2773_v42, %v3036_v40 }
  0xca   : > { %v878_v23 = vmul.f32 %v790_v20, %v578_v21  ;;  %v3076_v25 = vpop.eup %2542  ;;  %v555_v14 = vmax.f32 %v530_v17, 0.0 }
  0xcb   : > { %v655_v8 = vsub.f32 1.5, %v654_v53  ;;  %v792_v30 = vmul.f32 %v3076_v25, %v3046_v45  ;;  %v406_v22 = vpop.xlane.xlu0 %405  ;;  %vm798_vm2 = vweird.f32 %v3076_v25 }
  0xcc   : > { %v448_v18 = vpop.xlane.xlu2 %447  ;;  %v3082_v44 = vadd.f32 1e-05, %v555_v14  ;;  %v467_v27 = vmul.f32 %v406_v22, %v2852_v55  ;;  %2441 = vmatmul.msk.f32.gmra.mxu2 %vm253_vm0, %v878_v23  ;;  %vm799_vm5 = vmor %vm797_vm3, %vm798_vm2 }
  0xcd   : > { %v316_v28 = vpop.xlane.xlu1 %315  ;;  %v793_v39 = vmul.f32 %v3076_v25, %v792_v30  ;;  %v481_v37 = vmul.f32 %v448_v18, %v2852_v55  ;;  %v656_v32 = vmul.f32 %v2541_v4, %v655_v8 }
  0xce   : > { %v2545_v34 = vpop.eup %2544  ;;  %v3090_v12 = vmul.f32 %v2852_v55, %v316_v28  ;;  %2546 = vrsqrt.f32 %v3082_v44  ;;  %v517_v49 = vsub.f32 %v467_v27, %v492_v19  ;;  %vm807_vm9 = vweird.f32 %v3082_v44 }
  0xcf   : > { %v662_v46 = vmul.f32 %v2545_v34, %v3058_v11  ;;  %v794_v57 = vmul.f32 0.5, %v793_v39  ;;  %v660_v51 = vsel %vm659_vm1, %v2541_v4, %v656_v32  ;;  %vm668_vm4 = vweird.f32 %v2545_v34 }
  0xd0   : > { %v506_v33 = vmul.f32 %v3090_v12, %v3090_v12  ;;  %v542_v31 = vmax.f32 %v517_v49, 0.0  ;;  %v865_v29 = vmul.f32 %v660_v51, %v565_v43  ;;  %vm669_vm7 = vmor %vm667_vm6, %vm668_vm4 }
  0xd1   : > { %v663_v52 = vmul.f32 %v2545_v34, %v662_v46  ;;  %v795_v58 = vsub.f32 1.5, %v794_v57 }
  0xd2   : > { %v531_v61 = vsub.f32 %v481_v37, %v506_v33  ;;  %v3102_v0 = vadd.f32 1e-05, %v542_v31  ;;  %2428 = vmatmul.msk.f32.gmra.mxu0 %vm253_vm0, %v865_v29 }
  0xd3   : > { %v664_v36 = vmul.f32 0.5, %v663_v52  ;;  %v277_v6 = vpop.xlane.xlu0 %276  ;;  %v796_v24 = vmul.f32 %v3076_v25, %v795_v58 }
  0xd4   : > { %v556_v7 = vmax.f32 %v531_v61, 0.0  ;;  %v319_v63 = vpop.xlane.xlu2 %318  ;;  %v2547_v35 = vpop.eup %2546  ;;  %2548 = vrsqrt.f32 %v3102_v0  ;;  %v3110_v9 = vmul.f32 %v2852_v55, %v277_v6  ;;  %vm677_vm12 = vweird.f32 %v3102_v0 }
  0xd5   : > { %v665_v4 = vsub.f32 1.5, %v664_v36  ;;  %v409_v10 = vpop.xlane.xlu1 %408  ;;  %v802_v3 = vmul.f32 %v2547_v35, %v3082_v44  ;;  %v800_v59 = vsel %vm799_vm5, %v3076_v25, %v796_v24  ;;  %v3130_v17 = vmul.f32 %v2852_v55, %v319_v63 }
  0xd6   : > { %v3115_v13 = vadd.f32 1e-05, %v556_v7  ;;  %v468_v15 = vmul.f32 %v409_v10, %v2852_v55  ;;  %v493_v26 = vmul.f32 %v3110_v9, %v3110_v9  ;;  %v879_v45 = vmul.f32 %v800_v59, %v579_v1 }
  0xd7   : > { %v666_v21 = vmul.f32 %v2545_v34, %v665_v4  ;;  %v803_v16 = vmul.f32 %v2547_v35, %v802_v3  ;;  %vm808_vm8 = vweird.f32 %v2547_v35  ;;  %v507_v30 = vmul.f32 %v3130_v17, %v3130_v17 }
  0xd8   : > { %2550 = vrsqrt.f32 %v3115_v13  ;;  %v518_v41 = vsub.f32 %v468_v15, %v493_v26  ;;  %2442 = vmatmul.msk.f32.gmra.mxu2 %vm253_vm0, %v879_v45  ;;  %v580_v44 = vsub.f32 %v2784_v48, %v3053_v2  ;;  %vm809_vm10 = vmor %vm807_vm9, %vm808_vm8  ;;  %vm817_vm15 = vweird.f32 %v3115_v13 }
  0xd9   : > { %v670_v56 = vsel %vm669_vm7, %v2545_v34, %v666_v21  ;;  %v804_v11 = vmul.f32 0.5, %v803_v16 }
  0xda   : > { %v866_v20 = vmul.f32 %v670_v56, %v566_v38  ;;  %v3132_v53 = vpop.eup %2548  ;;  %v543_v23 = vmax.f32 %v518_v41, 0.0 }
  0xdb   : > { %v805_v25 = vsub.f32 1.5, %v804_v11  ;;  %v672_v42 = vmul.f32 %v3132_v53, %v3102_v0  ;;  %v451_v40 = vpop.xlane.xlu0 %450  ;;  %vm678_vm11 = vweird.f32 %v3132_v53 }
  0xdc   : > { %2429 = vmatmul.msk.f32.gmra.mxu0 %vm253_vm0, %v866_v20  ;;  %v412_v14 = vpop.xlane.xlu2 %411  ;;  %v3139_v8 = vadd.f32 1e-05, %v543_v23  ;;  %v482_v22 = vmul.f32 %v451_v40, %v2852_v55  ;;  %vm679_vm14 = vmor %vm677_vm12, %vm678_vm11 }
  0xdd   : > { %v280_v18 = vpop.xlane.xlu1 %279  ;;  %v673_v27 = vmul.f32 %v3132_v53, %v672_v42  ;;  %v469_v34 = vmul.f32 %v412_v14, %v2852_v55  ;;  %v806_v39 = vmul.f32 %v2547_v35, %v805_v25 }
  0xde   : > { %v2551_v19 = vpop.eup %2550  ;;  %v3146_v28 = vmul.f32 %v2852_v55, %v280_v18  ;;  %2552 = vrsqrt.f32 %v3139_v8  ;;  %v532_v32 = vsub.f32 %v482_v22, %v507_v30  ;;  %vm687_vm3 = vweird.f32 %v3139_v8 }
  0xdf   : > { %v812_v37 = vmul.f32 %v2551_v19, %v3115_v13  ;;  %v674_v43 = vmul.f32 0.5, %v673_v27  ;;  %v810_v49 = vsel %vm809_vm10, %v2547_v35, %v806_v39  ;;  %vm818_vm13 = vweird.f32 %v2551_v19 }
  0xe0   : > { %v494_v46 = vmul.f32 %v3146_v28, %v3146_v28  ;;  %v557_v33 = vmax.f32 %v532_v32, 0.0  ;;  %v880_v51 = vmul.f32 %v810_v49, %v580_v44  ;;  %v567_v35 = vsub.f32 %v2789_v50, %v3074_v47  ;;  %vm819_vm1 = vmor %vm817_vm15, %vm818_vm13 }
  0xe1   : > { %v813_v57 = vmul.f32 %v2551_v19, %v812_v37  ;;  %v675_v52 = vsub.f32 1.5, %v674_v43  ;;  %v581_v50 = vsub.f32 %v2797_v54, %v3090_v12 }
  0xe2   : > { %v519_v31 = vsub.f32 %v469_v34, %v494_v46  ;;  %v3156_v58 = vadd.f32 1e-05, %v557_v33  ;;  %2443 = vmatmul.msk.f32.gmra.mxu2 %vm253_vm0, %v880_v51 }
  0xe3   : > { %v814_v29 = vmul.f32 0.5, %v813_v57  ;;  %v322_v2 = vpop.xlane.xlu0 %321  ;;  %v676_v36 = vmul.f32 %v3132_v53, %v675_v52 }
  0xe4   : > { %v544_v48 = vmax.f32 %v519_v31, 0.0  ;;  %v283_v61 = vpop.xlane.xlu2 %282  ;;  %v2553_v7 = vpop.eup %2552  ;;  %2554 = vrsqrt.f32 %v3156_v58  ;;  %v3164_v63 = vmul.f32 %v2852_v55, %v322_v2  ;;  %vm827_vm6 = vweird.f32 %v3156_v58 }
  0xe5   : > { %v815_v6 = vsub.f32 1.5, %v814_v29  ;;  %v454_v24 = vpop.xlane.xlu1 %453  ;;  %v682_v4 = vmul.f32 %v2553_v7, %v3139_v8  ;;  %v680_v15 = vsel %vm679_vm14, %v3132_v53, %v676_v36  ;;  %v3184_v21 = vmul.f32 %v2852_v55, %v283_v61 }
  0xe6   : > { %v3169_v10 = vadd.f32 1e-05, %v544_v48  ;;  %v483_v1 = vmul.f32 %v454_v24, %v2852_v55  ;;  %v508_v3 = vmul.f32 %v3164_v63, %v3164_v63  ;;  %v867_v0 = vmul.f32 %v680_v15, %v567_v35 }
  0xe7   : > { %v816_v26 = vmul.f32 %v2551_v19, %v815_v6  ;;  %v683_v47 = vmul.f32 %v2553_v7, %v682_v4  ;;  %vm688_vm2 = vweird.f32 %v2553_v7  ;;  %v495_v53 = vmul.f32 %v3184_v21, %v3184_v21 }
  0xe8   : > { %2556 = vrsqrt.f32 %v3169_v10  ;;  %v533_v59 = vsub.f32 %v483_v1, %v508_v3  ;;  %2430 = vmatmul.msk.f32.gmra.mxu0 %vm253_vm0, %v867_v0  ;;  %v568_v8 = vsub.f32 %v2808_v60, %v3110_v9  ;;  %vm689_vm4 = vmor %vm687_vm3, %vm688_vm2  ;;  %v582_v2 = vsub.f32 %v2813_v62, %v3130_v17 }
  0xe9   : > { %v820_v38 = vsel %vm819_vm1, %v2551_v19, %v816_v26  ;;  %v684_v13 = vmul.f32 0.5, %v683_v47  ;;  %vm697_vm9 = vweird.f32 %v3169_v10  ;;  %v569_v62 = vsub.f32 %v2821_v5, %v3146_v28 }
  0xea   : > { %v881_v16 = vmul.f32 %v820_v38, %v581_v50  ;;  %v3186_v41 = vpop.eup %2554  ;;  %v558_v45 = vmax.f32 %v533_v59, 0.0 }
  0xeb   : > { %v685_v56 = vsub.f32 1.5, %v684_v13  ;;  %v822_v54 = vmul.f32 %v3186_v41, %v3156_v58  ;;  %v415_v12 = vpop.xlane.xlu0 %414  ;;  %vm828_vm5 = vweird.f32 %v3186_v41 }
  0xec   : > { %2444 = vmatmul.msk.f32.gmra.mxu2 %vm253_vm0, %v881_v16  ;;  %v457_v11 = vpop.xlane.xlu2 %456  ;;  %v3193_v20 = vadd.f32 1e-05, %v558_v45  ;;  %v470_v23 = vmul.f32 %v415_v12, %v2852_v55  ;;  %vm829_vm8 = vmor %vm827_vm6, %vm828_vm5 }
  0xed   : > { %v325_v25 = vpop.xlane.xlu1 %324  ;;  %v823_v40 = vmul.f32 %v3186_v41, %v822_v54  ;;  %v484_v30 = vmul.f32 %v457_v11, %v2852_v55  ;;  %v686_v22 = vmul.f32 %v2553_v7, %v685_v56  ;;  %v2622_v11 = vld [vmem:[%s2685_s24 + $0xb0] sm:$0xff] }
  0xee   : > { %v2557_v42 = vpop.eup %2556  ;;  %v3200_v14 = vmul.f32 %v2852_v55, %v325_v25  ;;  %2558 = vrsqrt.f32 %v3193_v20  ;;  %v520_v19 = vsub.f32 %v470_v23, %v495_v53  ;;  %vm837_vm12 = vweird.f32 %v3193_v20 }
  0xef   : > { %v692_v18 = vmul.f32 %v2557_v42, %v3169_v10  ;;  %v824_v27 = vmul.f32 0.5, %v823_v40  ;;  %v690_v39 = vsel %vm689_vm4, %v2553_v7, %v686_v22  ;;  %vm698_vm7 = vweird.f32 %v2557_v42 }
  0xf0   : > { %v509_v34 = vmul.f32 %v3200_v14, %v3200_v14  ;;  %v545_v37 = vmax.f32 %v520_v19, 0.0  ;;  %v868_v32 = vmul.f32 %v690_v39, %v568_v8  ;;  %vm699_vm10 = vmor %vm697_vm9, %vm698_vm7  ;;  %v583_v53 = vsub.f32 %v2622_v11, %v3164_v63  ;;  %v2623_v39 = vld [vmem:[%s2685_s24 + $0x48] sm:$0xff] }
  0xf1   : > { %v693_v44 = vmul.f32 %v2557_v42, %v692_v18  ;;  %v825_v43 = vsub.f32 1.5, %v824_v27 }
  0xf2   : > { %v534_v46 = vsub.f32 %v484_v30, %v509_v34  ;;  %v3210_v57 = vadd.f32 1e-05, %v545_v37  ;;  %2431 = vmatmul.msk.f32.gmra.mxu0 %vm253_vm0, %v868_v32 }
  0xf3   : > { %v694_v49 = vmul.f32 0.5, %v693_v44  ;;  %v286_v9 = vpop.xlane.xlu0 %285  ;;  %v826_v51 = vmul.f32 %v3186_v41, %v825_v43 }
  0xf4   : > { %v559_v60 = vmax.f32 %v534_v46, 0.0  ;;  %v328_v33 = vpop.xlane.xlu2 %327  ;;  %v2559_v52 = vpop.eup %2558  ;;  %2560 = vrsqrt.f32 %v3210_v57  ;;  %v3218_v29 = vmul.f32 %v2852_v55, %v286_v9  ;;  %vm707_vm15 = vweird.f32 %v3210_v57 }
  0xf5   : > { %v695_v31 = vsub.f32 1.5, %v694_v49  ;;  %v418_v48 = vpop.xlane.xlu1 %417  ;;  %v832_v61 = vmul.f32 %v2559_v52, %v3193_v20  ;;  %v830_v24 = vsel %vm829_vm8, %v3186_v41, %v826_v51  ;;  %v3238_v1 = vmul.f32 %v2852_v55, %v328_v33 }
  0xf6   : > { %v3223_v36 = vadd.f32 1e-05, %v559_v60  ;;  %v471_v7 = vmul.f32 %v418_v48, %v2852_v55  ;;  %v496_v6 = vmul.f32 %v3218_v29, %v3218_v29  ;;  %v882_v58 = vmul.f32 %v830_v24, %v582_v2  ;;  %v2624_v48 = vld [vmem:[%s2685_s24 + $0xb8] sm:$0xff] }
  0xf7   : > { %v696_v35 = vmul.f32 %v2557_v42, %v695_v31  ;;  %v833_v17 = vmul.f32 %v2559_v52, %v832_v61  ;;  %vm838_vm11 = vweird.f32 %v2559_v52  ;;  %v510_v38 = vmul.f32 %v3238_v1, %v3238_v1 }
  0xf8   : > { %2562 = vrsqrt.f32 %v3223_v36  ;;  %v521_v4 = vsub.f32 %v471_v7, %v496_v6  ;;  %2445 = vmatmul.msk.f32.gmra.mxu2 %vm253_vm0, %v882_v58  ;;  %vm839_vm13 = vmor %vm837_vm12, %vm838_vm11  ;;  %v570_v20 = vsub.f32 %v2623_v39, %v3184_v21  ;;  %vm847_vm3 = vweird.f32 %v3223_v36 }
  0xf9   : > { %v700_v3 = vsel %vm699_vm10, %v2557_v42, %v696_v35  ;;  %v834_v10 = vmul.f32 0.5, %v833_v17  ;;  %v584_v2 = vsub.f32 %v2624_v48, %v3200_v14 }
  0xfa   : > { %v869_v15 = vmul.f32 %v700_v3, %v569_v62  ;;  %v2561_v26 = vpop.eup %2560  ;;  %v546_v50 = vmax.f32 %v521_v4, 0.0 }
  0xfb   : > { %v835_v47 = vsub.f32 1.5, %v834_v10  ;;  %v702_v5 = vmul.f32 %v2561_v26, %v3210_v57  ;;  %v460_v28 = vpop.xlane.xlu0 %459  ;;  %vm708_vm14 = vweird.f32 %v2561_v26  ;;  %v2625_v10 = vld [vmem:[%s2685_s24 + $0x50] sm:$0xff] }
  0xfc   : > { %2432 = vmatmul.msk.f32.gmra.mxu0 %vm253_vm0, %v869_v15  ;;  %v421_v59 = vpop.xlane.xlu2 %420  ;;  %v3244_v0 = vadd.f32 1e-05, %v546_v50  ;;  %v485_v13 = vmul.f32 %v460_v28, %v2852_v55  ;;  %vm709_vm1 = vmor %vm707_vm15, %vm708_vm14  ;;  %v571_v15 = vsub.f32 %v2625_v10, %v3218_v29 }
  0xfd   : > { %v289_v16 = vpop.xlane.xlu1 %288  ;;  %v703_v45 = vmul.f32 %v2561_v26, %v702_v5  ;;  %v472_v54 = vmul.f32 %v421_v59, %v2852_v55  ;;  %v836_v12 = vmul.f32 %v2559_v52, %v835_v47 }
  0xfe   : > { %v2563_v41 = vpop.eup %2562  ;;  %v3250_v56 = vmul.f32 %v2852_v55, %v289_v16  ;;  %2564 = vrsqrt.f32 %v3244_v0  ;;  %v535_v25 = vsub.f32 %v485_v13, %v510_v38  ;;  %vm717_vm6 = vweird.f32 %v3244_v0  ;;  %v2626_v16 = vld [vmem:[%s2685_s24 + $0xc0] sm:$0xff] }
  0xff   : > { %v842_v23 = vmul.f32 %v2563_v41, %v3223_v36  ;;  %v704_v42 = vmul.f32 0.5, %v703_v45  ;;  %v840_v30 = vsel %vm839_vm13, %v2559_v52, %v836_v12  ;;  %vm848_vm2 = vweird.f32 %v2563_v41 }
 0x100   : > { %v497_v40 = vmul.f32 %v3250_v56, %v3250_v56  ;;  %v560_v8 = vmax.f32 %v535_v25, 0.0  ;;  %v883_v18 = vmul.f32 %v840_v30, %v583_v53  ;;  %vm849_vm4 = vmor %vm847_vm3, %vm848_vm2  ;;  %v585_v29 = vsub.f32 %v2626_v16, %v3238_v1  ;;  %v2627_v53 = vld [vmem:[%s2685_s24 + $0x58] sm:$0xff] }
 0x101   : > { %v843_v22 = vmul.f32 %v2563_v41, %v842_v23  ;;  %v705_v19 = vsub.f32 1.5, %v704_v42  ;;  %v572_v23 = vsub.f32 %v2627_v53, %v3250_v56  ;;  %v3300_v56 = vld [vmem:[%s4815_s2] ss:$0 sm:$0xff] }
 0x102   : > { %v522_v63 = vsub.f32 %v472_v54, %v497_v40  ;;  %v3262_v34 = vadd.f32 1e-05, %v560_v8  ;;  %2446 = vmatmul.msk.f32.gmra.mxu2 %vm253_vm0, %v883_v18  ;;  %v2628_v8 = vld [vmem:[%s2685_s24 + $0x60] sm:$0xff] }
 0x103   : > { %v844_v27 = vmul.f32 0.5, %v843_v22  ;;  %v292_v37 = vpop.xlane.xlu0 %291  ;;  %v706_v32 = vmul.f32 %v2561_v26, %v705_v19 }
 0x104   : > { %v547_v44 = vmax.f32 %v522_v63, 0.0  ;;  %v2565_v43 = vpop.eup %2564  ;;  %2566 = vrsqrt.f32 %v3262_v34  ;;  %v3270_v49 = vmul.f32 %v2852_v55, %v292_v37  ;;  %vm857_vm9 = vweird.f32 %v3262_v34 }
 0x105   : > { %v845_v46 = vsub.f32 1.5, %v844_v27  ;;  %v424_v60 = vpop.xlane.xlu1 %423  ;;  %v712_v9 = vmul.f32 %v2565_v43, %v3244_v0  ;;  %v710_v33 = vsel %vm709_vm1, %v2561_v26, %v706_v32  ;;  %vm718_vm5 = vweird.f32 %v2565_v43 }
 0x106   : > { %v597_v21 = vadd.f32 1e-05, %v547_v44  ;;  %v473_v57 = vmul.f32 %v424_v60, %v2852_v55  ;;  %v498_v51 = vmul.f32 %v3270_v49, %v3270_v49  ;;  %v870_v52 = vmul.f32 %v710_v33, %v570_v20  ;;  %vm719_vm7 = vmor %vm717_vm6, %vm718_vm5 }
 0x107   : > { %v846_v31 = vmul.f32 %v2563_v41, %v845_v46  ;;  %v713_v61 = vmul.f32 %v2565_v43, %v712_v9  ;;  %v573_v18 = vsub.f32 %v2628_v8, %v3270_v49 }
 0x108   : > { %2568 = vrsqrt.f32 %v597_v21  ;;  %v523_v7 = vsub.f32 %v473_v57, %v498_v51  ;;  %2433 = vmatmul.msk.f32.gmra.mxu0 %vm253_vm0, %v870_v52  ;;  %vm727_vm12 = vweird.f32 %v597_v21 }
 0x109   : > { %v850_v6 = vsel %vm849_vm4, %v2563_v41, %v846_v31  ;;  %v714_v55 = vmul.f32 0.5, %v713_v61 }
 0x10a   : > { %v884_v24 = vmul.f32 %v850_v6, %v584_v2  ;;  %v2567_v35 = vpop.eup %2566  ;;  %v548_v36 = vmax.f32 %v523_v7, 0.0 }
 0x10b   : > { %v715_v62 = vsub.f32 1.5, %v714_v55  ;;  %v852_v17 = vmul.f32 %v2567_v35, %v3262_v34  ;;  %vm858_vm8 = vweird.f32 %v2567_v35 }
 0x10c   : > { %2447 = vmatmul.msk.f32.gmra.mxu2 %vm253_vm0, %v884_v24  ;;  %v598_v4 = vadd.f32 1e-05, %v548_v36  ;;  %vm859_vm10 = vmor %vm857_vm9, %vm858_vm8 }
 0x10d   : > { %v853_v58 = vmul.f32 %v2567_v35, %v852_v17  ;;  %v716_v3 = vmul.f32 %v2565_v43, %v715_v62 }
 0x10e   : > { %v2569_v14 = vpop.eup %2568  ;;  %2570 = vrsqrt.f32 %v598_v4  ;;  %vm737_vm15 = vweird.f32 %v598_v4 }
 0x10f   : > { %v722_v26 = vmul.f32 %v2569_v14, %v597_v21  ;;  %v854_v50 = vmul.f32 0.5, %v853_v58  ;;  %v720_v47 = vsel %vm719_vm7, %v2565_v43, %v716_v3  ;;  %vm728_vm11 = vweird.f32 %v2569_v14 }
 0x110   : > { %v871_v28 = vmul.f32 %v720_v47, %v571_v15  ;;  %vm729_vm13 = vmor %vm727_vm12, %vm728_vm11 }
 0x111   : > { %v723_v5 = vmul.f32 %v2569_v14, %v722_v26  ;;  %v855_v59 = vsub.f32 1.5, %v854_v50 }
 0x112   : > { %2434 = vmatmul.msk.f32.gmra.mxu0 %vm253_vm0, %v871_v28 }
 0x113   : > { %v724_v38 = vmul.f32 0.5, %v723_v5  ;;  %v856_v0 = vmul.f32 %v2567_v35, %v855_v59 }
 0x114   : > { %v2571_v13 = vpop.eup %2570 }
 0x115   : > { %v725_v41 = vsub.f32 1.5, %v724_v38  ;;  %v732_v45 = vmul.f32 %v2571_v13, %v598_v4  ;;  %v860_v54 = vsel %vm859_vm10, %v2567_v35, %v856_v0  ;;  %vm738_vm14 = vweird.f32 %v2571_v13 }
 0x116   : > { %v885_v12 = vmul.f32 %v860_v54, %v585_v29  ;;  %vm739_vm1 = vmor %vm737_vm15, %vm738_vm14 }
 0x117   : > { %v726_v11 = vmul.f32 %v2569_v14, %v725_v41  ;;  %v733_v25 = vmul.f32 %v2571_v13, %v732_v45 }
 0x118   : > { %2448 = vmatmul.msk.f32.gmra.mxu2 %vm253_vm0, %v885_v12 }
 0x119   : > { %v730_v42 = vsel %vm729_vm13, %v2569_v14, %v726_v11  ;;  %v734_v40 = vmul.f32 0.5, %v733_v25 }
 0x11a   : > { %v872_v30 = vmul.f32 %v730_v42, %v572_v23 }
 0x11b   : > { %v735_v1 = vsub.f32 1.5, %v734_v40 }
 0x11c   : > { %2435 = vmatmul.msk.f32.gmra.mxu0 %vm253_vm0, %v872_v30 }
 0x11d   : > { %v736_v22 = vmul.f32 %v2571_v13, %v735_v1 }
 0x11f   : > { %v740_v19 = vsel %vm739_vm1, %v2571_v13, %v736_v22 }
 0x120   : > { %v873_v63 = vmul.f32 %v740_v19, %v573_v18 }
 0x124   : > { %2436 = vmatmul.msk.f32.gmra.mxu0 %vm253_vm0, %v873_v63 }
 0x127   : > { %v986_v27 = vpop.f32.mrf.mxu0 }
 0x128   : > { %v3303_v34 = vadd.f32 %v3300_v56, %v986_v27 }
 0x12a   : > { %v3306_v39 = vmul.f32 0.70710677, %v3303_v34 }
 0x12c   : > { %v1111_v20 = vmul.f32 %v3306_v39, %v3306_v39  ;;  %v1025_v43 = vpop.f32.mrf.mxu2 }
 0x12d   : > { %v3317_v49 = vadd.f32 %v3300_v56, %v1025_v43 }
 0x12e   : > { %v3310_v44 = vmin.f32 %v1111_v20, 16.0 }
 0x12f   : > { %v989_v37 = vpop.f32.mrf.mxu0  ;;  %v3321_v21 = vmul.f32 0.70710677, %v3317_v49 }
 0x130   : > { %v1124_v32 = vmul.f32 3.8918573e-05, %v3310_v44  ;;  %v3314_v46 = vadd.f32 %v3300_v56, %v989_v37  ;;  %v1113_v9 = vmul.f32 2.1237322e-06, %v3310_v44 }
 0x131   : > { %v1631_v51 = vmul.f32 %v3321_v21, %v3321_v21 }
 0x132   : > { %v1125_v60 = vadd.f32 0.001143296, %v1124_v32  ;;  %v3324_v57 = vmul.f32 0.70710677, %v3314_v46  ;;  %v1114_v48 = vadd.f32 0.00028619796, %v1113_v9 }
 0x133   : > { %v3331_v2 = vmin.f32 %v1631_v51, 16.0 }
 0x134   : > { %v1126_v33 = vmul.f32 %v1125_v60, %v3310_v44  ;;  %v1151_v52 = vmul.f32 %v3324_v57, %v3324_v57  ;;  %v1028_v6 = vpop.f32.mrf.mxu2  ;;  %v1115_v17 = vmul.f32 %v1114_v48, %v3310_v44 }
 0x135   : > { %v1633_v55 = vmul.f32 2.1237322e-06, %v3331_v2  ;;  %v1644_v24 = vmul.f32 3.8918573e-05, %v3331_v2  ;;  %v3339_v35 = vadd.f32 %v3300_v56, %v1028_v6 }
 0x136   : > { %v1127_v31 = vadd.f32 0.014752088, %v1126_v33  ;;  %v3333_v61 = vmin.f32 %v1151_v52, 16.0  ;;  %v1116_v28 = vadd.f32 0.0036580483, %v1115_v17 }
 0x137   : > { %v1634_v4 = vadd.f32 0.00028619796, %v1633_v55  ;;  %v1645_v14 = vadd.f32 0.001143296, %v1644_v24  ;;  %v3346_v26 = vmul.f32 0.70710677, %v3339_v35 }
 0x138   : > { %v1128_v7 = vmul.f32 %v1127_v31, %v3310_v44  ;;  %v1164_v62 = vmul.f32 3.8918573e-05, %v3333_v61  ;;  %v1153_v58 = vmul.f32 2.1237322e-06, %v3333_v61  ;;  %v1117_v12 = vmul.f32 %v1116_v28, %v3310_v44 }
 0x139   : > { %v992_v3 = vpop.f32.mrf.mxu0  ;;  %v1646_v15 = vmul.f32 %v1645_v14, %v3331_v2  ;;  %v1635_v59 = vmul.f32 %v1634_v4, %v3331_v2  ;;  %v1671_v16 = vmul.f32 %v3346_v26, %v3346_v26 }
 0x13a   : > { %v1129_v36 = vadd.f32 0.112945676, %v1128_v7  ;;  %v1165_v10 = vadd.f32 0.001143296, %v1164_v62  ;;  %v3351_v5 = vadd.f32 %v3300_v56, %v992_v3  ;;  %v1154_v0 = vadd.f32 0.00028619796, %v1153_v58 }
 0x13b   : > { %v1647_v38 = vadd.f32 0.014752088, %v1646_v15  ;;  %v1636_v11 = vadd.f32 0.0036580483, %v1635_v59  ;;  %v3363_v25 = vmin.f32 %v1671_v16, 16.0 }
 0x13c   : > { %v1130_v50 = vmul.f32 %v1129_v36, %v3310_v44  ;;  %v1166_v47 = vmul.f32 %v1165_v10, %v3333_v61  ;;  %v3359_v54 = vmul.f32 0.70710677, %v3351_v5  ;;  %v1155_v23 = vmul.f32 %v1154_v0, %v3333_v61  ;;  %v1031_v52 = vpop.f32.mrf.mxu2 }
 0x13d   : > { %v1648_v29 = vmul.f32 %v1647_v38, %v3331_v2  ;;  %v1118_v22 = vadd.f32 0.05243302, %v1117_v12  ;;  %v1637_v8 = vmul.f32 %v1636_v11, %v3331_v2  ;;  %v1673_v27 = vmul.f32 2.1237322e-06, %v3363_v25 }
 0x13e   : > { %v1167_v13 = vadd.f32 0.014752088, %v1166_v47  ;;  %v1131_v41 = vadd.f32 0.4994258, %v1130_v50  ;;  %v1191_v1 = vmul.f32 %v3359_v54, %v3359_v54  ;;  %v1156_v19 = vadd.f32 0.0036580483, %v1155_v23 }
 0x13f   : > { %v1649_v53 = vadd.f32 0.112945676, %v1648_v29  ;;  %v1684_v20 = vmul.f32 3.8918573e-05, %v3363_v25  ;;  %v1119_v9 = vmul.f32 %v1118_v22, %v3310_v44  ;;  %v1638_v33 = vadd.f32 0.05243302, %v1637_v8 }
 0x140   : > { %v1168_v45 = vmul.f32 %v1167_v13, %v3333_v61  ;;  %v1132_v40 = vmul.f32 %v1131_v41, %v3310_v44  ;;  %v3376_v60 = vmin.f32 %v1191_v1, 16.0  ;;  %v1157_v51 = vmul.f32 %v1156_v19, %v3333_v61 }
 0x141   : > { %v1650_v42 = vmul.f32 %v1649_v53, %v3331_v2  ;;  %v1685_v43 = vadd.f32 0.001143296, %v1684_v20  ;;  %v1674_v7 = vadd.f32 0.00028619796, %v1673_v27  ;;  %v1032_v24 = vadd.f32 %v3300_v56, %v1031_v52 }
 0x142   : > { %v1169_v30 = vadd.f32 0.112945676, %v1168_v45  ;;  %v3374_v32 = vadd.f32 1.0, %v1132_v40  ;;  %v1204_v55 = vmul.f32 3.8918573e-05, %v3376_v60  ;;  %v1639_v62 = vmul.f32 %v1638_v33, %v3331_v2 }
 0x143   : > { %v1651_v18 = vadd.f32 0.4994258, %v1650_v42  ;;  %v1686_v6 = vmul.f32 %v1685_v43, %v3363_v25  ;;  %v1120_v36 = vadd.f32 0.18741608, %v1119_v9  ;;  %v1158_v17 = vadd.f32 0.05243302, %v1157_v51 }
 0x144   : > { %v1170_v63 = vmul.f32 %v1169_v30, %v3333_v61  ;;  %2572 = vrcp.f32 %v3374_v32  ;;  %v1675_v58 = vmul.f32 %v1674_v7, %v3363_v25  ;;  %v1193_v3 = vmul.f32 2.1237322e-06, %v3376_v60 }
 0x145   : > { %v1652_v37 = vmul.f32 %v1651_v18, %v3331_v2  ;;  %v1687_v4 = vadd.f32 0.014752088, %v1686_v6  ;;  %v1205_v15 = vadd.f32 0.001143296, %v1204_v55  ;;  %v3392_v50 = vmul.f32 0.70710677, %v1032_v24  ;;  %v995_v33 = vpop.f32.mrf.mxu0 }
 0x146   : > { %v1171_v48 = vadd.f32 0.4994258, %v1170_v63  ;;  %v1121_v47 = vmul.f32 %v1120_v36, %v3310_v44  ;;  %v1640_v28 = vadd.f32 0.18741608, %v1639_v62  ;;  %v1159_v59 = vmul.f32 %v1158_v17, %v3333_v61  ;;  %v1034_v17 = vpop.f32.mrf.mxu2 }
 0x147   : > { %v3380_v31 = vadd.f32 1.0, %v1652_v37  ;;  %v1688_v10 = vmul.f32 %v1687_v4, %v3363_v25  ;;  %v1676_v13 = vadd.f32 0.0036580483, %v1675_v58  ;;  %v1194_v29 = vadd.f32 0.00028619796, %v1193_v3 }
 0x148   : > { %v1172_v14 = vmul.f32 %v1171_v48, %v3333_v61  ;;  %v1206_v41 = vmul.f32 %v1205_v15, %v3376_v60  ;;  %v3404_v12 = vmul.f32 0.5, %v3303_v34  ;;  %v3407_v11 = vmul.f32 0.5, %v3314_v46 }
 0x149   : > { %2574 = vrcp.f32 %v3380_v31  ;;  %v1689_v16 = vadd.f32 0.112945676, %v1688_v10  ;;  %v1711_v53 = vmul.f32 %v3392_v50, %v3392_v50  ;;  %v1122_v23 = vadd.f32 1.1283791, %v1121_v47 }
 0x14a   : > { %v3396_v38 = vpop.eup %2572  ;;  %v3398_v0 = vadd.f32 1.0, %v1172_v14  ;;  %v1641_v40 = vmul.f32 %v1640_v28, %v3331_v2  ;;  %v1160_v30 = vadd.f32 0.18741608, %v1159_v59  ;;  %v1677_v34 = vmul.f32 %v1676_v13, %v3363_v25 }
 0x14b   : > { %v1690_v44 = vmul.f32 %v1689_v16, %v3363_v25  ;;  %v1135_v42 = vmul.f32 %v3396_v38, %v3374_v32  ;;  %v1207_v1 = vadd.f32 0.014752088, %v1206_v41  ;;  %v3417_v22 = vmin.f32 %v1711_v53, 16.0  ;;  %v2164_v16 = vld [vmem:[%s4816_s3 + $0x18] sm:$0xff] }
 0x14c   : > { %2576 = vrcp.f32 %v3398_v0  ;;  %v1145_v46 = vand.u32 2147483648, %v3374_v32  ;;  %v3421_v8 = vmul.f32 0.5, %v3317_v49  ;;  %v1195_v19 = vmul.f32 %v1194_v29, %v3376_v60  ;;  %2256 = vmatpush.msra.mxu1 %v2164_v16  ;;  %2505 = vmatpush.msra.mxu3 %v2164_v16 }
 0x14d   : > { %v3427_v2 = vmul.f32 0.5, %v3339_v35  ;;  %v1691_v63 = vadd.f32 0.4994258, %v1690_v44  ;;  %v3430_v27 = vmul.f32 0.5, %v3351_v5  ;;  %v1208_v20 = vmul.f32 %v1207_v1, %v3376_v60  ;;  %v2163_v1 = vld [vmem:[%s4816_s3 + $0x10] sm:$0xff] }
 0x14e   : > { %v1136_v37 = vsub.f32 1.0, %v1135_v42  ;;  %v1642_v43 = vadd.f32 1.1283791, %v1641_v40  ;;  %v1161_v9 = vmul.f32 %v1160_v30, %v3333_v61  ;;  %v1724_v49 = vmul.f32 3.8918573e-05, %v3417_v22  ;;  %2257 = vmatpush.msra.mxu1 %v2163_v1  ;;  %2506 = vmatpush.msra.mxu3 %v2163_v1 }
 0x14f   : > { %v3401_v45 = vpop.eup %2574  ;;  %v3436_v51 = vmul.f32 %v1122_v23, %v3306_v39  ;;  %v1143_v52 = vand.u32 2147483647, %v3374_v32  ;;  %v1678_v35 = vadd.f32 0.05243302, %v1677_v34  ;;  %v1209_v48 = vadd.f32 0.112945676, %v1208_v20 }
 0x150   : > { %v1655_v18 = vmul.f32 %v3401_v45, %v3380_v31  ;;  %v3439_v7 = vor.u32 1.1754944e-38, %v1145_v46  ;;  %v1196_v6 = vadd.f32 0.0036580483, %v1195_v19  ;;  %v1725_v55 = vadd.f32 0.001143296, %v1724_v49 }
 0x151   : > { %vm1139_vm2 = vweird.f32 %v3374_v32  ;;  %vm1140_vm3 = vweird.f32 %v3396_v38  ;;  %v1692_v61 = vmul.f32 %v1691_v63, %v3363_v25  ;;  %v3446_v62 = vmul.f32 0.5, %v1032_v24 }
 0x152   : > { %v1656_v5 = vsub.f32 1.0, %v1655_v18  ;;  %v3441_v36 = vpop.eup %2576  ;;  %v3449_v39 = vadd.f32 %v3300_v56, %v995_v33  ;;  %v1137_v4 = vmul.f32 %v3396_v38, %v1136_v37  ;;  %v3453_v14 = vmul.f32 %v1642_v43, %v3321_v21  ;;  %vm3508_vm8 = vmor %vm1139_vm2, %vm1140_vm3 }
 0x153   : > { %v1162_v58 = vadd.f32 1.1283791, %v1161_v9  ;;  %v1210_v3 = vmul.f32 %v1209_v48, %v3376_v60  ;;  %vm1659_vm4 = vweird.f32 %v3380_v31  ;;  %v1663_v10 = vand.u32 2147483647, %v3380_v31 }
 0x154   : > { %v1665_v15 = vand.u32 2147483648, %v3380_v31  ;;  %v1679_v24 = vmul.f32 %v1678_v35, %v3363_v25  ;;  %v1726_v47 = vmul.f32 %v1725_v55, %v3417_v22  ;;  %v1657_v28 = vmul.f32 %v3401_v45, %v1656_v5 }
 0x155   : > { %v1175_v59 = vmul.f32 %v3441_v36, %v3398_v0  ;;  %v1197_v21 = vmul.f32 %v1196_v6, %v3376_v60  ;;  %v1713_v13 = vmul.f32 2.1237322e-06, %v3417_v22  ;;  %v3469_v29 = vadd.f32 1.0, %v1692_v61 }
 0x156   : > { %v1727_v41 = vadd.f32 0.014752088, %v1726_v47  ;;  %v3472_v44 = vmul.f32 0.70710677, %v3449_v39  ;;  %v3475_v53 = vadd.f32 %v3300_v56, %v1034_v17  ;;  %v1138_v23 = vadd.f32 %v3396_v38, %v1137_v4  ;;  %v1037_v17 = vpop.f32.mrf.mxu2 }
 0x157   : > { %vm3478_vm5 = vcmp.eq.f32.partialorder %v1143_v52, 8.507059e+37  ;;  %v3483_v40 = vmul.f32 %v1162_v58, %v3324_v57  ;;  %v1185_v30 = vand.u32 2147483648, %v3398_v0  ;;  %v1211_v34 = vadd.f32 0.4994258, %v1210_v3 }
 0x158   : > { %vm1660_vm6 = vweird.f32 %v3401_v45  ;;  %v1680_v46 = vadd.f32 0.18741608, %v1679_v24  ;;  %v1728_v18 = vmul.f32 %v1727_v41, %v3417_v22  ;;  %v1231_v19 = vmul.f32 %v3472_v44, %v3472_v44  ;;  %v998_v41 = vpop.f32.mrf.mxu0 }
 0x159   : > { %v1658_v57 = vadd.f32 %v3401_v45, %v1657_v28  ;;  %vm3494_vm7 = vcmp.eq.f32.partialorder %v1663_v10, 8.507059e+37  ;;  %v1176_v20 = vsub.f32 1.0, %v1175_v59  ;;  %v1198_v37 = vadd.f32 0.05243302, %v1197_v21  ;;  %vm3525_vm10 = vmor %vm1659_vm4, %vm1660_vm6  ;;  %v2162_v10 = vld [vmem:[%s4816_s3 + $0x8] sm:$0xff] }
 0x15a   : > { %v3499_v43 = vmul.f32 0.70710677, %v3475_v53  ;;  %2578 = vrcp.f32 %v3469_v29  ;;  %v1714_v9 = vadd.f32 0.00028619796, %v1713_v13  ;;  %v1729_v49 = vadd.f32 0.112945676, %v1728_v18  ;;  %2258 = vmatpush.msra.mxu1 %v2162_v10  ;;  %2507 = vmatpush.msra.mxu3 %v2162_v10 }
 0x15b   : > { %v3502_v33 = vmin.f32 %v1231_v19, 16.0  ;;  %v1666_v35 = vor.u32 1.1754944e-38, %v1665_v15  ;;  %vm1179_vm9 = vweird.f32 %v3398_v0  ;;  %v1183_v48 = vand.u32 2147483647, %v3398_v0 }
 0x15c   : > { %v1212_v5 = vmul.f32 %v1211_v34, %v3376_v60  ;;  %v1142_v6 = vsel %vm3508_vm8, %v3396_v38, %v1138_v23  ;;  %v1681_v55 = vmul.f32 %v1680_v46, %v3363_v25  ;;  %v1730_v61 = vmul.f32 %v1729_v49, %v3417_v22 }
 0x15d   : > { %v1233_v32 = vmul.f32 2.1237322e-06, %v3502_v33  ;;  %v1177_v58 = vmul.f32 %v3441_v36, %v1176_v20  ;;  %v1199_v3 = vmul.f32 %v1198_v37, %v3376_v60  ;;  %v1244_v38 = vmul.f32 3.8918573e-05, %v3502_v33 }
 0x15e   : > { %v1751_v25 = vmul.f32 %v3499_v43, %v3499_v43  ;;  %v1662_v31 = vsel %vm3525_vm10, %v3401_v45, %v1658_v57  ;;  %v1186_v15 = vor.u32 1.1754944e-38, %v1185_v30  ;;  %v1715_v24 = vmul.f32 %v1714_v9, %v3417_v22  ;;  %v2161_v45 = vld [vmem:[%s4816_s3] sm:$0xff] }
 0x15f   : > { %v1731_v47 = vadd.f32 0.4994258, %v1730_v61  ;;  %vm3541_vm11 = vcmp.eq.f32.partialorder %v1183_v48, 8.507059e+37  ;;  %v3545_v59 = vadd.f32 1.0, %v1212_v5  ;;  %v1234_v21 = vadd.f32 0.00028619796, %v1233_v32  ;;  %2259 = vmatpush.msra.mxu1 %v2161_v45  ;;  %2508 = vmatpush.msra.mxu3 %v2161_v45 }
 0x160   : > { %v1245_v13 = vadd.f32 0.001143296, %v1244_v38  ;;  %v3548_v16 = vadd.f32 %v3300_v56, %v1037_v17  ;;  %v3553_v23 = vpop.eup %2578  ;;  %v1147_v30 = vsel %vm3478_vm5, %v3439_v7, %v1142_v6  ;;  %vm1180_vm12 = vweird.f32 %v3441_v36 }
 0x161   : > { %v1682_v34 = vadd.f32 1.1283791, %v1681_v55  ;;  %v3559_v1 = vmin.f32 %v1751_v25, 16.0  ;;  %v1178_v46 = vadd.f32 %v3441_v36, %v1177_v58  ;;  %v1200_v18 = vadd.f32 0.18741608, %v1199_v3  ;;  %vm3583_vm13 = vmor %vm1179_vm9, %vm1180_vm12 }
 0x162   : > { %v1732_v19 = vmul.f32 %v1731_v47, %v3417_v22  ;;  %v1246_v57 = vmul.f32 %v1245_v13, %v3502_v33  ;;  %v1667_v20 = vsel %vm3494_vm7, %v1666_v35, %v1662_v31  ;;  %v1716_v37 = vadd.f32 0.0036580483, %v1715_v24 }
 0x163   : > { %v1235_v7 = vmul.f32 %v1234_v21, %v3502_v33  ;;  %v3568_v42 = vadd.f32 %v3300_v56, %v998_v41  ;;  %v1695_v9 = vmul.f32 %v3553_v23, %v3469_v29  ;;  %2580 = vrcp.f32 %v3545_v59 }
 0x164   : > { %v1247_v49 = vadd.f32 0.014752088, %v1246_v57  ;;  %v3574_v52 = vmul.f32 0.70710677, %v3548_v16  ;;  %v3577_v48 = vmul.f32 %v1147_v30, %v3436_v51  ;;  %v3588_v35 = vmul.f32 0.5, %v3449_v39 }
 0x165   : > { %v1753_v5 = vmul.f32 2.1237322e-06, %v3559_v1  ;;  %v1764_v6 = vmul.f32 3.8918573e-05, %v3559_v1  ;;  %v1182_v51 = vsel %vm3583_vm13, %v3441_v36, %v1178_v46  ;;  %v3596_v55 = vmul.f32 %v1682_v34, %v3346_v26 }
 0x166   : > { %v1201_v0 = vmul.f32 %v1200_v18, %v3376_v60  ;;  %v3599_v61 = vadd.f32 1.0, %v1732_v19  ;;  %v3602_v32 = vmul.f32 %v1667_v20, %v3453_v14  ;;  %v1717_v39 = vmul.f32 %v1716_v37, %v3417_v22 }
 0x167   : > { %v1236_v17 = vadd.f32 0.0036580483, %v1235_v7  ;;  %v1248_v4 = vmul.f32 %v1247_v49, %v3502_v33  ;;  %v1696_v58 = vsub.f32 1.0, %v1695_v9  ;;  %v1765_v3 = vadd.f32 0.001143296, %v1764_v6 }
 0x168   : > { %v1791_v36 = vmul.f32 %v3574_v52, %v3574_v52  ;;  %v3609_v26 = vmul.f32 0.70710677, %v3568_v42  ;;  %v1187_v60 = vsel %vm3541_vm11, %v1186_v15, %v1182_v51  ;;  %v1705_v38 = vand.u32 2147483648, %v3469_v29 }
 0x169   : > { %v1249_v14 = vadd.f32 0.112945676, %v1248_v4  ;;  %v1754_v25 = vadd.f32 0.00028619796, %v1753_v5  ;;  %v3614_v10 = vpop.eup %2580  ;;  %vm1699_vm14 = vweird.f32 %v3469_v29  ;;  %v1202_v31 = vadd.f32 1.1283791, %v1201_v0 }
 0x16a   : > { %2582 = vrcp.f32 %v3599_v61  ;;  %v1766_v24 = vmul.f32 %v1765_v3, %v3559_v1  ;;  %v3619_v47 = vmin.f32 %v1791_v36, 16.0  ;;  %v1703_v21 = vand.u32 2147483647, %v3469_v29 }
 0x16b   : > { %v1718_v13 = vadd.f32 0.05243302, %v1717_v39  ;;  %v1237_v15 = vmul.f32 %v1236_v17, %v3502_v33  ;;  %v1250_v28 = vmul.f32 %v1249_v14, %v3502_v33  ;;  %v1697_v41 = vmul.f32 %v3553_v23, %v1696_v58  ;;  %v1001_v14 = vpop.f32.mrf.mxu0 }
 0x16c   : > { %v1767_v45 = vadd.f32 0.014752088, %v1766_v24  ;;  %v1804_v30 = vmul.f32 3.8918573e-05, %v3619_v47  ;;  %v1271_v34 = vmul.f32 %v3609_v26, %v3609_v26  ;;  %v3629_v46 = vmul.f32 %v1187_v60, %v3483_v40 }
 0x16d   : > { %v1706_v18 = vor.u32 1.1754944e-38, %v1705_v38  ;;  %v1215_v19 = vmul.f32 %v3614_v10, %v3545_v59  ;;  %v1755_v57 = vmul.f32 %v1754_v25, %v3559_v1  ;;  %v3635_v20 = vmul.f32 %v1202_v31, %v3359_v54 }
 0x16e   : > { %v1251_v37 = vadd.f32 0.4994258, %v1250_v28  ;;  %v1768_v7 = vmul.f32 %v1767_v45, %v3559_v1  ;;  %v1793_v9 = vmul.f32 2.1237322e-06, %v3619_v47  ;;  %vm3639_vm15 = vcmp.eq.f32.partialorder %v1703_v21, 8.507059e+37 }
 0x16f   : > { %v1719_v40 = vmul.f32 %v1718_v13, %v3417_v22  ;;  %v1238_v63 = vadd.f32 0.05243302, %v1237_v15  ;;  %v3645_v5 = vmul.f32 0.5, %v3475_v53  ;;  %v1805_v6 = vadd.f32 0.001143296, %v1804_v30 }
 0x170   : > { %v3647_v51 = vpop.eup %2582  ;;  %v1698_v54 = vadd.f32 %v3553_v23, %v1697_v41  ;;  %vm1700_vm1 = vweird.f32 %v3553_v23  ;;  %v1769_v0 = vadd.f32 0.112945676, %v1768_v7  ;;  %v3651_v39 = vmin.f32 %v1271_v34, 16.0 }
 0x171   : > { %v1216_v17 = vsub.f32 1.0, %v1215_v19  ;;  %v1756_v4 = vadd.f32 0.0036580483, %v1755_v57  ;;  %v3654_v58 = vmul.f32 0.5, %v3548_v16  ;;  %v1806_v3 = vmul.f32 %v1805_v6, %v3619_v47  ;;  %vm3662_vm2 = vmor %vm1699_vm14, %vm1700_vm1 }
 0x172   : > { %v1225_v53 = vand.u32 2147483648, %v3545_v59  ;;  %v1252_v36 = vmul.f32 %v1251_v37, %v3502_v33  ;;  %v1770_v60 = vmul.f32 %v1769_v0, %v3559_v1  ;;  %v1794_v38 = vadd.f32 0.00028619796, %v1793_v9 }
 0x173   : > { %v1720_v31 = vadd.f32 0.18741608, %v1719_v40  ;;  %v1735_v16 = vmul.f32 %v3647_v51, %v3599_v61  ;;  %v1239_v24 = vmul.f32 %v1238_v63, %v3502_v33  ;;  %v1807_v21 = vadd.f32 0.014752088, %v1806_v3 }
 0x174   : > { %v1702_v13 = vsel %vm3662_vm2, %v3553_v23, %v1698_v54  ;;  %vm1219_vm3 = vweird.f32 %v3545_v59  ;;  %v1223_v15 = vand.u32 2147483647, %v3545_v59  ;;  %v1273_v29 = vmul.f32 2.1237322e-06, %v3651_v39 }
 0x175   : > { %v1217_v28 = vmul.f32 %v3614_v10, %v1216_v17  ;;  %v1757_v41 = vmul.f32 %v1756_v4, %v3559_v1  ;;  %v1771_v45 = vadd.f32 0.4994258, %v1770_v60  ;;  %v3678_v30 = vadd.f32 %v3300_v56, %v1001_v14 }
 0x176   : > { %v1226_v34 = vor.u32 1.1754944e-38, %v1225_v53  ;;  %v3680_v19 = vadd.f32 1.0, %v1252_v36  ;;  %v1795_v57 = vmul.f32 %v1794_v38, %v3619_v47  ;;  %v1808_v23 = vmul.f32 %v1807_v21, %v3619_v47  ;;  %v1040_v21 = vpop.f32.mrf.mxu2 }
 0x177   : > { %v1721_v37 = vmul.f32 %v1720_v31, %v3417_v22  ;;  %v1736_v7 = vsub.f32 1.0, %v1735_v16  ;;  %v1240_v9 = vadd.f32 0.18741608, %v1239_v24  ;;  %v1772_v40 = vmul.f32 %v1771_v45, %v3559_v1 }
 0x178   : > { %v1707_v63 = vsel %vm3639_vm15, %v1706_v18, %v1702_v13  ;;  %vm3688_vm4 = vcmp.eq.f32.partialorder %v1223_v15, 8.507059e+37  ;;  %v1809_v54 = vadd.f32 0.112945676, %v1808_v23  ;;  %v1274_v0 = vadd.f32 0.00028619796, %v1273_v29 }
 0x179   : > { %v1284_v17 = vmul.f32 3.8918573e-05, %v3651_v39  ;;  %v1218_v4 = vadd.f32 %v3614_v10, %v1217_v28  ;;  %vm1220_vm5 = vweird.f32 %v3614_v10  ;;  %v1758_v22 = vadd.f32 0.05243302, %v1757_v41 }
 0x17a   : > { %v3696_v3 = vmul.f32 0.70710677, %v3678_v30  ;;  %2584 = vrcp.f32 %v3680_v19  ;;  %v1796_v49 = vadd.f32 0.0036580483, %v1795_v57  ;;  %v1810_v18 = vmul.f32 %v1809_v54, %v3619_v47  ;;  %vm3716_vm6 = vmor %vm1219_vm3, %vm1220_vm5 }
 0x17b   : > { %v1285_v53 = vadd.f32 0.001143296, %v1284_v17  ;;  %v1722_v36 = vadd.f32 1.1283791, %v1721_v37  ;;  %v1737_v60 = vmul.f32 %v3647_v51, %v1736_v7  ;;  %v3701_v38 = vadd.f32 1.0, %v1772_v40 }
 0x17c   : > { %v3704_v14 = vmul.f32 0.5, %v3568_v42  ;;  %v3707_v25 = vmul.f32 %v1707_v63, %v3596_v55  ;;  %v1743_v31 = vand.u32 2147483647, %v3599_v61  ;;  %v1241_v16 = vmul.f32 %v1240_v9, %v3502_v33 }
 0x17d   : > { %v1275_v24 = vmul.f32 %v1274_v0, %v3651_v39  ;;  %v1759_v42 = vmul.f32 %v1758_v22, %v3559_v1  ;;  %v1811_v15 = vadd.f32 0.4994258, %v1810_v18  ;;  %v1286_v55 = vmul.f32 %v1285_v53, %v3651_v39 }
 0x17e   : > { %v1311_v29 = vmul.f32 %v3696_v3, %v3696_v3  ;;  %v1222_v33 = vsel %vm3716_vm6, %v3614_v10, %v1218_v4  ;;  %vm1740_vm7 = vweird.f32 %v3647_v51  ;;  %v1745_v59 = vand.u32 2147483648, %v3599_v61 }
 0x17f   : > { %v1797_v28 = vmul.f32 %v1796_v49, %v3619_v47  ;;  %v1738_v41 = vadd.f32 %v3647_v51, %v1737_v60  ;;  %2586 = vrcp.f32 %v3701_v38  ;;  %v1287_v45 = vadd.f32 0.014752088, %v1286_v55 }
 0x180   : > { %v3733_v57 = vadd.f32 %v3300_v56, %v1040_v21  ;;  %v3735_v23 = vpop.eup %2584  ;;  %vm1739_vm8 = vweird.f32 %v3599_v61  ;;  %v1242_v37 = vadd.f32 1.1283791, %v1241_v16  ;;  %v1812_v10 = vmul.f32 %v1811_v15, %v3619_v47 }
 0x181   : > { %v1276_v7 = vadd.f32 0.0036580483, %v1275_v24  ;;  %v1227_v9 = vsel %vm3688_vm4, %v1226_v34, %v1222_v33  ;;  %v1760_v40 = vadd.f32 0.18741608, %v1759_v42  ;;  %v1288_v63 = vmul.f32 %v1287_v45, %v3651_v39  ;;  %vm3747_vm9 = vmor %vm1739_vm8, %vm1740_vm7 }
 0x182   : > { %v3742_v54 = vmin.f32 %v1311_v29, 16.0  ;;  %v1723_v0 = vmul.f32 %v1722_v36, %v3392_v50  ;;  %vm3751_vm10 = vcmp.eq.f32.partialorder %v1743_v31, 8.507059e+37  ;;  %v1265_v6 = vand.u32 2147483648, %v3680_v19 }
 0x183   : > { %v1798_v34 = vadd.f32 0.05243302, %v1797_v28  ;;  %v1742_v4 = vsel %vm3747_vm9, %v3647_v51, %v1738_v41  ;;  %v1746_v22 = vor.u32 1.1754944e-38, %v1745_v59  ;;  %v1255_v50 = vmul.f32 %v3735_v23, %v3680_v19 }
 0x184   : > { %v3762_v49 = vmul.f32 0.70710677, %v3733_v57  ;;  %v3765_v18 = vmul.f32 %v1227_v9, %v3635_v20  ;;  %v3768_v53 = vmul.f32 %v1242_v37, %v3472_v44  ;;  %v3770_v36 = vadd.f32 1.0, %v1812_v10 }
 0x185   : > { %v1277_v60 = vmul.f32 %v1276_v7, %v3651_v39  ;;  %v3773_v31 = vpop.eup %2586  ;;  %v1263_v51 = vand.u32 2147483647, %v3680_v19  ;;  %v1761_v16 = vmul.f32 %v1760_v40, %v3559_v1  ;;  %v1289_v24 = vadd.f32 0.112945676, %v1288_v63 }
 0x186   : > { %v1313_v21 = vmul.f32 2.1237322e-06, %v3742_v54  ;;  %v1747_v20 = vsel %vm3751_vm10, %v1746_v22, %v1742_v4  ;;  %v3780_v13 = vor.u32 1.1754944e-38, %v1265_v6  ;;  %v1799_v44 = vmul.f32 %v1798_v34, %v3619_v47 }
 0x187   : > { %v1324_v42 = vmul.f32 3.8918573e-05, %v3742_v54  ;;  %v1256_v15 = vsub.f32 1.0, %v1255_v50  ;;  %v1290_v55 = vmul.f32 %v1289_v24, %v3651_v39  ;;  %v1831_v29 = vmul.f32 %v3762_v49, %v3762_v49 }
 0x188   : > { %v2449_v1 = vclamps-f32 %v3577_v48, 1.0  ;;  %v1775_v33 = vmul.f32 %v3773_v31, %v3701_v38  ;;  %2588 = vrcp.f32 %v3770_v36  ;;  %v1278_v59 = vadd.f32 0.05243302, %v1277_v60 }
 0x189   : > { %v1325_v28 = vadd.f32 0.001143296, %v1324_v42  ;;  %v1291_v41 = vadd.f32 0.4994258, %v1290_v55  ;;  %v1314_v45 = vadd.f32 0.00028619796, %v1313_v21  ;;  %v3793_v7 = vmul.f32 %v1747_v20, %v1723_v0 }
 0x18a   : > { %v3791_v37 = vmin.f32 %v1831_v29, 16.0  ;;  %v2111_v10 = vadd.f32 1.0, %v2449_v1  ;;  %vm1259_vm11 = vweird.f32 %v3680_v19  ;;  %v1762_v9 = vadd.f32 1.1283791, %v1761_v16 }
 0x18b   : > { %v1326_v40 = vmul.f32 %v1325_v28, %v3742_v54  ;;  %v2462_v48 = vclamps-f32 %v3602_v32, 1.0  ;;  %v1785_v63 = vand.u32 2147483648, %v3701_v38  ;;  %v1292_v17 = vmul.f32 %v1291_v41, %v3651_v39  ;;  %v1004_v28 = vpop.f32.mrf.mxu0 }
 0x18c   : > { %v3801_v61 = vmul.f32 0.5, %v3678_v30  ;;  %v1833_v6 = vmul.f32 2.1237322e-06, %v3791_v37  ;;  %v1257_v34 = vmul.f32 %v3735_v23, %v1256_v15  ;;  %v1800_v0 = vadd.f32 0.18741608, %v1799_v44 }
 0x18d   : > { %v1327_v4 = vadd.f32 0.014752088, %v1326_v40  ;;  %v1844_v22 = vmul.f32 3.8918573e-05, %v3791_v37  ;;  %v1776_v50 = vsub.f32 1.0, %v1775_v33  ;;  %v1279_v60 = vmul.f32 %v1278_v59, %v3651_v39 }
 0x18e   : > { %v1315_v32 = vmul.f32 %v1314_v45, %v3742_v54  ;;  %v2136_v16 = vmul.f32 %v2111_v10, %v3404_v12  ;;  %v3809_v24 = vpop.eup %2588  ;;  %v3811_v21 = vadd.f32 1.0, %v1292_v17  ;;  %v2124_v42 = vadd.f32 1.0, %v2462_v48 }
 0x18f   : > { %v1328_v30 = vmul.f32 %v1327_v4, %v3742_v54  ;;  %v1845_v20 = vadd.f32 0.001143296, %v1844_v22  ;;  %vm1260_vm12 = vweird.f32 %v3735_v23  ;;  %vm3815_vm13 = vcmp.eq.f32.partialorder %v1263_v51, 8.507059e+37  ;;  %v1043_v51 = vpop.f32.mrf.mxu2 }
 0x190   : > { %v3820_v15 = vmul.f32 %v1762_v9, %v3499_v43  ;;  %v1783_v55 = vand.u32 2147483647, %v3701_v38  ;;  %v1834_v12 = vadd.f32 0.00028619796, %v1833_v6  ;;  %2474 = vmatmul.msk.f32.vlgmr.msra.gmra.mxu1 %vm253_vm0, %v2136_v16  ;;  %v1258_v29 = vadd.f32 %v3735_v23, %v1257_v34  ;;  %vm3840_vm15 = vmor %vm1259_vm11, %vm1260_vm12 }
 0x191   : > { %v3825_v1 = vor.u32 1.1754944e-38, %v1785_v63  ;;  %v1801_v33 = vmul.f32 %v1800_v0, %v3619_v47  ;;  %v1329_v59 = vadd.f32 0.112945676, %v1328_v30  ;;  %vm1779_vm14 = vweird.f32 %v3701_v38 }
 0x192   : > { %v1815_v43 = vmul.f32 %v3809_v24, %v3770_v36  ;;  %v1316_v41 = vadd.f32 0.0036580483, %v1315_v32  ;;  %v1846_v45 = vmul.f32 %v1845_v20, %v3791_v37  ;;  %v2149_v10 = vmul.f32 %v2124_v42, %v3421_v8 }
 0x193   : > { %v1777_v9 = vmul.f32 %v3773_v31, %v1776_v50  ;;  %v1280_v40 = vadd.f32 0.18741608, %v1279_v60  ;;  %2590 = vrcp.f32 %v3811_v21  ;;  %v1330_v47 = vmul.f32 %v1329_v59, %v3742_v54 }
 0x194   : > { %v1835_v63 = vmul.f32 %v1834_v12, %v3791_v37  ;;  %v1847_v17 = vadd.f32 0.014752088, %v1846_v45  ;;  %2487 = vmatmul.msk.f32.vlgmr.msra.gmra.mxu3 %vm253_vm0, %v2149_v10  ;;  %v3847_v8 = vadd.f32 %v3300_v56, %v1004_v28  ;;  %v3850_v6 = vadd.f32 %v3300_v56, %v1043_v51 }
 0x195   : > { %v1262_v34 = vsel %vm3840_vm15, %v3735_v23, %v1258_v29  ;;  %v1802_v19 = vadd.f32 1.1283791, %v1801_v33  ;;  %v1331_v0 = vadd.f32 0.4994258, %v1330_v47  ;;  %v3856_v4 = vmul.f32 0.5, %v3733_v57 }
 0x196   : > { %vm3858_vm1 = vcmp.eq.f32.partialorder %v1783_v55, 8.507059e+37  ;;  %v1816_v50 = vsub.f32 1.0, %v1815_v43  ;;  %v1317_v60 = vmul.f32 %v1316_v41, %v3742_v54  ;;  %v1848_v32 = vmul.f32 %v1847_v17, %v3791_v37 }
 0x197   : > { %v3865_v56 = vmul.f32 0.70710677, %v3847_v8  ;;  %v1778_v16 = vadd.f32 %v3773_v31, %v1777_v9  ;;  %vm1780_vm2 = vweird.f32 %v3773_v31  ;;  %v1281_v23 = vmul.f32 %v1280_v40, %v3651_v39 }
 0x198   : > { %v1332_v57 = vmul.f32 %v1331_v0, %v3742_v54  ;;  %v1836_v30 = vadd.f32 0.0036580483, %v1835_v63  ;;  %v1849_v20 = vadd.f32 0.112945676, %v1848_v32  ;;  %v3874_v55 = vmul.f32 0.70710677, %v3850_v6  ;;  %vm3896_vm3 = vmor %vm1779_vm14, %vm1780_vm2 }
 0x199   : > { %v1351_v42 = vmul.f32 %v3865_v56, %v3865_v56  ;;  %v3876_v12 = vpop.eup %2590  ;;  %v1267_v29 = vsel %vm3815_vm13, %v3780_v13, %v1262_v34  ;;  %v3882_v33 = vmul.f32 %v1802_v19, %v3574_v52  ;;  %v1823_v39 = vand.u32 2147483647, %v3770_v36 }
 0x19a   : > { %v3885_v59 = vadd.f32 1.0, %v1332_v57  ;;  %v1817_v28 = vmul.f32 %v3809_v24, %v1816_v50  ;;  %v1318_v51 = vadd.f32 0.05243302, %v1317_v60  ;;  %v1871_v41 = vmul.f32 %v3874_v55, %v3874_v55 }
 0x19b   : > { %v3888_v43 = vmin.f32 %v1351_v42, 16.0  ;;  %vm1819_vm4 = vweird.f32 %v3770_v36  ;;  %v1825_v52 = vand.u32 2147483648, %v3770_v36  ;;  %v1282_v44 = vadd.f32 1.1283791, %v1281_v23 }
 0x19c   : > { %v1850_v45 = vmul.f32 %v1849_v20, %v3791_v37  ;;  %v1782_v10 = vsel %vm3896_vm3, %v3773_v31, %v1778_v16  ;;  %2592 = vrcp.f32 %v3885_v59  ;;  %v1837_v9 = vmul.f32 %v1836_v30, %v3791_v37 }
 0x19d   : > { %v3908_v38 = vmin.f32 %v1871_v41, 16.0  ;;  %v3911_v40 = vmul.f32 %v1267_v29, %v3768_v53  ;;  %v1295_v47 = vmul.f32 %v3876_v12, %v3811_v21  ;;  %v1353_v48 = vmul.f32 2.1237322e-06, %v3888_v43 }
 0x19e   : > { %v1364_v63 = vmul.f32 3.8918573e-05, %v3888_v43  ;;  %v1818_v17 = vadd.f32 %v3809_v24, %v1817_v28  ;;  %vm1820_vm5 = vweird.f32 %v3809_v24  ;;  %vm3919_vm6 = vcmp.eq.f32.partialorder %v1823_v39, 8.507059e+37 }
 0x19f   : > { %v1319_v34 = vmul.f32 %v1318_v51, %v3742_v54  ;;  %v1787_v53 = vsel %vm3858_vm1, %v3825_v1, %v1782_v10  ;;  %v1851_v19 = vadd.f32 0.4994258, %v1850_v45  ;;  %v1884_v50 = vmul.f32 3.8918573e-05, %v3908_v38  ;;  %vm3933_vm7 = vmor %vm1819_vm4, %vm1820_vm5 }
 0x1a0   : > { %v1365_v0 = vadd.f32 0.001143296, %v1364_v63  ;;  %v1826_v60 = vor.u32 1.1754944e-38, %v1825_v52  ;;  %v3929_v32 = vmul.f32 %v1282_v44, %v3609_v26  ;;  %v1838_v16 = vadd.f32 0.05243302, %v1837_v9 }
 0x1a1   : > { %v1354_v23 = vadd.f32 0.00028619796, %v1353_v48  ;;  %v1296_v30 = vsub.f32 1.0, %v1295_v47  ;;  %v1885_v1 = vadd.f32 0.001143296, %v1884_v50  ;;  %v2450_v20 = vclamps-f32 %v3629_v46, 1.0 }
 0x1a2   : > { %v1366_v22 = vmul.f32 %v1365_v0, %v3888_v43  ;;  %v3939_v42 = vpop.eup %2592  ;;  %v3942_v29 = vmul.f32 %v1787_v53, %v3820_v15  ;;  %v1822_v26 = vsel %vm3933_vm7, %v3809_v24, %v1818_v17  ;;  %v1320_v36 = vadd.f32 0.18741608, %v1319_v34  ;;  %v1046_v17 = vpop.f32.mrf.mxu2 }
 0x1a3   : > { %v1873_v39 = vmul.f32 2.1237322e-06, %v3908_v38  ;;  %vm1299_vm8 = vweird.f32 %v3811_v21  ;;  %v1303_v28 = vand.u32 2147483647, %v3811_v21  ;;  %v1305_v51 = vand.u32 2147483648, %v3811_v21 }
 0x1a4   : > { %v1852_v46 = vmul.f32 %v1851_v19, %v3791_v37  ;;  %v1839_v41 = vmul.f32 %v1838_v16, %v3791_v37  ;;  %v1355_v15 = vmul.f32 %v1354_v23, %v3888_v43  ;;  %v1367_v13 = vadd.f32 0.014752088, %v1366_v22 }
 0x1a5   : > { %v1886_v52 = vmul.f32 %v1885_v1, %v3908_v38  ;;  %v1827_v24 = vsel %vm3919_vm6, %v1826_v60, %v1822_v26  ;;  %v1297_v44 = vmul.f32 %v3876_v12, %v1296_v30  ;;  %v1335_v45 = vmul.f32 %v3939_v42, %v3885_v59  ;;  %v3977_v30 = vld [vmem:[%s4815_s2] ss:$0 sm:$0xff]  ;;  %v1007_v26 = vpop.f32.mrf.mxu0 }
 0x1a6   : > { %v2112_v10 = vadd.f32 1.0, %v2450_v20  ;;  %v1321_v9 = vmul.f32 %v1320_v36, %v3742_v54  ;;  %v1368_v47 = vmul.f32 %v1367_v13, %v3888_v43  ;;  %v1874_v48 = vadd.f32 0.00028619796, %v1873_v39 }
 0x1a7   : > { %v1887_v63 = vadd.f32 0.014752088, %v1886_v52  ;;  %vm1300_vm9 = vweird.f32 %v3876_v12  ;;  %vm3963_vm10 = vcmp.eq.f32.partialorder %v1303_v28, 8.507059e+37  ;;  %v3967_v31 = vadd.f32 1.0, %v1852_v46 }
 0x1a8   : > { %v2137_v53 = vmul.f32 %v2112_v10, %v3407_v11  ;;  %v2463_v19 = vclamps-f32 %v3707_v25, 1.0  ;;  %v1840_v0 = vadd.f32 0.18741608, %v1839_v41  ;;  %v1356_v50 = vadd.f32 0.0036580483, %v1355_v15  ;;  %vm3996_vm11 = vmor %vm1299_vm8, %vm1300_vm9 }
 0x1a9   : > { %v1369_v54 = vadd.f32 0.112945676, %v1368_v47  ;;  %v1888_v60 = vmul.f32 %v1887_v63, %v3908_v38  ;;  %v1298_v16 = vadd.f32 %v3876_v12, %v1297_v44  ;;  %v1336_v23 = vsub.f32 1.0, %v1335_v45 }
 0x1aa   : > { %2475 = vmatmul.msk.f32.gmra.mxu1 %vm253_vm0, %v2137_v53  ;;  %v2125_v57 = vadd.f32 1.0, %v2463_v19  ;;  %v3980_v11 = vadd.f32 %v3977_v30, %v1046_v17  ;;  %v1306_v25 = vor.u32 1.1754944e-38, %v1305_v51  ;;  %v1875_v1 = vmul.f32 %v1874_v48, %v3908_v38 }
 0x1ab   : > { %v1370_v22 = vmul.f32 %v1369_v54, %v3888_v43  ;;  %v1889_v20 = vadd.f32 0.112945676, %v1888_v60  ;;  %v3985_v36 = vmul.f32 %v1827_v24, %v3882_v33  ;;  %2594 = vrcp.f32 %v3967_v31 }
 0x1ac   : > { %v3989_v39 = vmul.f32 0.5, %v3847_v8  ;;  %v2150_v28 = vmul.f32 %v2125_v57, %v3427_v2  ;;  %v1322_v46 = vadd.f32 1.1283791, %v1321_v9  ;;  %v1357_v41 = vmul.f32 %v1356_v50, %v3888_v43 }
 0x1ad   : > { %v1371_v33 = vadd.f32 0.4994258, %v1370_v22  ;;  %v1890_v15 = vmul.f32 %v1889_v20, %v3908_v38  ;;  %v1302_v8 = vsel %vm3996_vm11, %v3876_v12, %v1298_v16  ;;  %v1337_v2 = vmul.f32 %v3939_v42, %v1336_v23  ;;  %v1010_v22 = vpop.f32.mrf.mxu0 }
 0x1ae   : > { %v1841_v13 = vmul.f32 %v1840_v0, %v3791_v37  ;;  %2488 = vmatmul.msk.f32.gmra.mxu3 %vm253_vm0, %v2150_v28  ;;  %v4009_v21 = vmul.f32 0.70710677, %v3980_v11  ;;  %v1876_v24 = vadd.f32 0.0036580483, %v1875_v1  ;;  %v2451_v45 = vclamps-f32 %v3765_v18, 1.0 }
 0x1af   : > { %v1372_v52 = vmul.f32 %v1371_v33, %v3888_v43  ;;  %v1891_v44 = vadd.f32 0.4994258, %v1890_v15  ;;  %v1343_v10 = vand.u32 2147483647, %v3885_v59  ;;  %v1345_v9 = vand.u32 2147483648, %v3885_v59 }
 0x1b0   : > { %v4016_v12 = vmul.f32 0.5, %v3850_v6  ;;  %v1911_v37 = vmul.f32 %v4009_v21, %v4009_v21  ;;  %v1307_v47 = vsel %vm3963_vm10, %v1306_v25, %v1302_v8  ;;  %vm1340_vm12 = vweird.f32 %v3939_v42 }
 0x1b1   : > { %v1358_v48 = vadd.f32 0.05243302, %v1357_v41  ;;  %v2113_v63 = vadd.f32 1.0, %v2451_v45  ;;  %v4023_v17 = vpop.eup %2594  ;;  %v1338_v18 = vadd.f32 %v3939_v42, %v1337_v2  ;;  %v4026_v53 = vadd.f32 1.0, %v1372_v52 }
 0x1b2   : > { %v1892_v19 = vmul.f32 %v1891_v44, %v3908_v38  ;;  %v4029_v6 = vmin.f32 %v1911_v37, 16.0  ;;  %v1323_v0 = vmul.f32 %v1322_v46, %v3696_v3  ;;  %vm1339_vm13 = vweird.f32 %v3885_v59 }
 0x1b3   : > { %v1842_v34 = vadd.f32 1.1283791, %v1841_v13  ;;  %v1877_v50 = vmul.f32 %v1876_v24, %v3908_v38  ;;  %v4035_v54 = vmul.f32 %v1307_v47, %v3929_v32  ;;  %vm4037_vm14 = vcmp.eq.f32.partialorder %v1343_v10, 8.507059e+37  ;;  %vm4046_vm15 = vmor %vm1339_vm13, %vm1340_vm12 }
 0x1b4   : > { %v1346_v16 = vor.u32 1.1754944e-38, %v1345_v9  ;;  %v4042_v23 = vadd.f32 %v3977_v30, %v1007_v26  ;;  %v1855_v59 = vmul.f32 %v4023_v17, %v3967_v31  ;;  %v1913_v32 = vmul.f32 2.1237322e-06, %v4029_v6 }
 0x1b5   : > { %v1924_v57 = vmul.f32 3.8918573e-05, %v4029_v6  ;;  %v2138_v25 = vmul.f32 %v2113_v63, %v3430_v27  ;;  %v1342_v1 = vsel %vm4046_vm15, %v3939_v42, %v1338_v18  ;;  %v1359_v20 = vmul.f32 %v1358_v48, %v3888_v43 }
 0x1b6   : > { %2596 = vrcp.f32 %v4026_v53  ;;  %v4060_v26 = vadd.f32 1.0, %v1892_v19  ;;  %v4063_v28 = vmul.f32 %v1842_v34, %v3762_v49  ;;  %v1878_v51 = vadd.f32 0.05243302, %v1877_v50  ;;  %v1049_v50 = vpop.f32.mrf.mxu2 }
 0x1b7   : > { %v1914_v46 = vadd.f32 0.00028619796, %v1913_v32  ;;  %2476 = vmatmul.msk.f32.gmra.mxu1 %vm253_vm0, %v2138_v25  ;;  %v2464_v27 = vclamps-f32 %v3793_v7, 1.0  ;;  %v1865_v41 = vand.u32 2147483648, %v3967_v31  ;;  %v1925_v33 = vadd.f32 0.001143296, %v1924_v57 }
 0x1b8   : > { %v4069_v42 = vmul.f32 0.70710677, %v4042_v23  ;;  %v4072_v15 = vadd.f32 %v3977_v30, %v1010_v22  ;;  %v1347_v8 = vsel %vm4037_vm14, %v1346_v16, %v1342_v1  ;;  %v1856_v49 = vsub.f32 1.0, %v1855_v59 }
 0x1b9   : > { %v1915_v2 = vmul.f32 %v1914_v46, %v4029_v6  ;;  %v2126_v13 = vadd.f32 1.0, %v2464_v27  ;;  %v1360_v52 = vadd.f32 0.18741608, %v1359_v20  ;;  %2598 = vrcp.f32 %v4060_v26 }
 0x1ba   : > { %v1926_v7 = vmul.f32 %v1925_v33, %v4029_v6  ;;  %v1391_v24 = vmul.f32 %v4069_v42, %v4069_v42  ;;  %vm1859_vm1 = vweird.f32 %v3967_v31  ;;  %v1879_v44 = vmul.f32 %v1878_v51, %v3908_v38 }
 0x1bb   : > { %v1916_v45 = vadd.f32 0.0036580483, %v1915_v2  ;;  %v2151_v10 = vmul.f32 %v2126_v13, %v3446_v62  ;;  %v4085_v9 = vmul.f32 0.70710677, %v4072_v15  ;;  %v1863_v47 = vand.u32 2147483647, %v3967_v31 }
 0x1bc   : > { %v4087_v37 = vpop.eup %2596  ;;  %v1866_v48 = vor.u32 1.1754944e-38, %v1865_v41  ;;  %v1927_v63 = vadd.f32 0.014752088, %v1926_v7  ;;  %v4090_v18 = vmin.f32 %v1391_v24, 16.0  ;;  %v4092_v19 = vmul.f32 %v1347_v8, %v1323_v0 }
 0x1bd   : > { %v1857_v34 = vmul.f32 %v4023_v17, %v1856_v49  ;;  %vm1860_vm2 = vweird.f32 %v4023_v17  ;;  %2489 = vmatmul.msk.f32.gmra.mxu3 %vm253_vm0, %v2151_v10  ;;  %v1431_v62 = vmul.f32 %v4085_v9, %v4085_v9  ;;  %v1361_v60 = vmul.f32 %v1360_v52, %v3888_v43 }
 0x1be   : > { %v1928_v16 = vmul.f32 %v1927_v63, %v4029_v6  ;;  %v1393_v3 = vmul.f32 2.1237322e-06, %v4090_v18  ;;  %v1404_v59 = vmul.f32 3.8918573e-05, %v4090_v18  ;;  %v1375_v0 = vmul.f32 %v4087_v37, %v4026_v53  ;;  %vm4132_vm4 = vmor %vm1859_vm1, %vm1860_vm2 }
 0x1bf   : > { %v1880_v32 = vadd.f32 0.18741608, %v1879_v44  ;;  %v1917_v57 = vmul.f32 %v1916_v45, %v4029_v6  ;;  %v4106_v25 = vmin.f32 %v1431_v62, 16.0  ;;  %v4108_v22 = vpop.eup %2598  ;;  %v4111_v43 = vadd.f32 %v3977_v30, %v1049_v50 }
 0x1c0   : > { %v1929_v1 = vadd.f32 0.112945676, %v1928_v16  ;;  %v1394_v20 = vadd.f32 0.00028619796, %v1393_v3  ;;  %v1405_v51 = vadd.f32 0.001143296, %v1404_v59  ;;  %v1858_v46 = vadd.f32 %v4023_v17, %v1857_v34 }
 0x1c1   : > { %vm4114_vm3 = vcmp.eq.f32.partialorder %v1863_v47, 8.507059e+37  ;;  %v4119_v41 = vmul.f32 0.5, %v3980_v11  ;;  %v1433_v33 = vmul.f32 2.1237322e-06, %v4106_v25  ;;  %v1444_v8 = vmul.f32 3.8918573e-05, %v4106_v25 }
 0x1c2   : > { %v1362_v49 = vadd.f32 1.1283791, %v1361_v60  ;;  %v1930_v2 = vmul.f32 %v1929_v1, %v4029_v6  ;;  %v1395_v13 = vmul.f32 %v1394_v20, %v4090_v18  ;;  %v1406_v52 = vmul.f32 %v1405_v51, %v4090_v18 }
 0x1c3   : > { %v1376_v7 = vsub.f32 1.0, %v1375_v0  ;;  %v1895_v24 = vmul.f32 %v4108_v22, %v4060_v26  ;;  %v1918_v44 = vadd.f32 0.05243302, %v1917_v57  ;;  %v1434_v45 = vadd.f32 0.00028619796, %v1433_v33 }
 0x1c4   : > { %v1881_v10 = vmul.f32 %v1880_v32, %v3908_v38  ;;  %v1931_v47 = vadd.f32 0.4994258, %v1930_v2  ;;  %v1407_v63 = vadd.f32 0.014752088, %v1406_v52  ;;  %v4138_v34 = vmul.f32 0.70710677, %v4111_v43 }
 0x1c5   : > { %v1862_v62 = vsel %vm4132_vm4, %v4023_v17, %v1858_v46  ;;  %v1396_v50 = vadd.f32 0.0036580483, %v1395_v13  ;;  %v1435_v60 = vmul.f32 %v1434_v45, %v4106_v25  ;;  %v1445_v16 = vadd.f32 0.001143296, %v1444_v8 }
 0x1c6   : > { %v4145_v31 = vmul.f32 %v1362_v49, %v3865_v56  ;;  %v1932_v3 = vmul.f32 %v1931_v47, %v4029_v6  ;;  %v4149_v38 = vmul.f32 0.5, %v4042_v23  ;;  %v1408_v59 = vmul.f32 %v1407_v63, %v4090_v18 }
 0x1c7   : > { %v1377_v0 = vmul.f32 %v4087_v37, %v1376_v7  ;;  %v1383_v32 = vand.u32 2147483647, %v4026_v53  ;;  %v1896_v57 = vsub.f32 1.0, %v1895_v24  ;;  %v1446_v17 = vmul.f32 %v1445_v16, %v4106_v25 }
 0x1c8   : > { %v1919_v1 = vmul.f32 %v1918_v44, %v4029_v6  ;;  %v4156_v20 = vadd.f32 1.0, %v1932_v3  ;;  %v1409_v56 = vadd.f32 0.112945676, %v1408_v59  ;;  %v1951_v51 = vmul.f32 %v4138_v34, %v4138_v34 }
 0x1c9   : > { %v1397_v23 = vmul.f32 %v1396_v50, %v4090_v18  ;;  %v1436_v46 = vadd.f32 0.0036580483, %v1435_v60  ;;  %v1447_v33 = vadd.f32 0.014752088, %v1446_v17  ;;  %v2452_v8 = vclamps-f32 %v3911_v40, 1.0 }
 0x1ca   : > { %v4164_v49 = vsel %vm4114_vm3, %v1866_v48, %v1862_v62  ;;  %vm1379_vm5 = vweird.f32 %v4026_v53  ;;  %v1385_v2 = vand.u32 2147483648, %v4026_v53  ;;  %2600 = vrcp.f32 %v4156_v20 }
 0x1cb   : > { %v1882_v13 = vadd.f32 1.1283791, %v1881_v10  ;;  %v1897_v52 = vmul.f32 %v4108_v22, %v1896_v57  ;;  %v1410_v7 = vmul.f32 %v1409_v56, %v4090_v18  ;;  %v1448_v24 = vmul.f32 %v1447_v33, %v4106_v25 }
 0x1cc   : > { %v1378_v44 = vadd.f32 %v4087_v37, %v1377_v0  ;;  %vm1380_vm6 = vweird.f32 %v4087_v37  ;;  %vm4174_vm7 = vcmp.eq.f32.partialorder %v1383_v32, 8.507059e+37  ;;  %v4178_v48 = vmin.f32 %v1951_v51, 16.0 }
 0x1cd   : > { %v2114_v27 = vadd.f32 1.0, %v2452_v8  ;;  %v1920_v45 = vadd.f32 0.18741608, %v1919_v1  ;;  %v1398_v11 = vadd.f32 0.05243302, %v1397_v23  ;;  %v1437_v10 = vmul.f32 %v1436_v46, %v4106_v25  ;;  %vm4193_vm9 = vmor %vm1379_vm5, %vm1380_vm6 }
 0x1ce   : > { %v1449_v47 = vadd.f32 0.112945676, %v1448_v24  ;;  %v1411_v63 = vadd.f32 0.4994258, %v1410_v7  ;;  %v1964_v62 = vmul.f32 3.8918573e-05, %v4178_v48  ;;  %v1898_v3 = vadd.f32 %v4108_v22, %v1897_v52 }
 0x1cf   : > { %v2139_v50 = vmul.f32 %v2114_v27, %v3588_v35  ;;  %v2465_v60 = vclamps-f32 %v3942_v29, 1.0  ;;  %v1386_v16 = vor.u32 1.1754944e-38, %v1385_v2  ;;  %vm1900_vm8 = vweird.f32 %v4108_v22 }
 0x1d0   : > { %v1953_v59 = vmul.f32 2.1237322e-06, %v4178_v48  ;;  %v4187_v0 = vpop.eup %2600  ;;  %v1903_v35 = vand.u32 2147483647, %v4060_v26  ;;  %v1905_v29 = vand.u32 2147483648, %v4060_v26  ;;  %v1450_v57 = vmul.f32 %v1449_v47, %v4106_v25 }
 0x1d1   : > { %v1965_v17 = vadd.f32 0.001143296, %v1964_v62  ;;  %2477 = vmatmul.msk.f32.gmra.mxu1 %vm253_vm0, %v2139_v50  ;;  %v1382_v1 = vsel %vm4193_vm9, %v4087_v37, %v1378_v44  ;;  %vm1899_vm10 = vweird.f32 %v4060_v26  ;;  %v1438_v53 = vadd.f32 0.05243302, %v1437_v10  ;;  %v1052_v44 = vpop.f32.mrf.mxu2 }
 0x1d2   : > { %v2127_v56 = vadd.f32 1.0, %v2465_v60  ;;  %vm4205_vm11 = vmor %vm1899_vm10, %vm1900_vm8  ;;  %v1921_v23 = vmul.f32 %v1920_v45, %v4029_v6  ;;  %v1399_v46 = vmul.f32 %v1398_v11, %v4090_v18  ;;  %v1412_v33 = vmul.f32 %v1411_v63, %v4090_v18 }
 0x1d3   : > { %v1966_v8 = vmul.f32 %v1965_v17, %v4178_v48  ;;  %v1902_v37 = vsel %vm4205_vm11, %v4108_v22, %v1898_v3  ;;  %v1935_v26 = vmul.f32 %v4187_v0, %v4156_v20  ;;  %v1954_v2 = vadd.f32 0.00028619796, %v1953_v59 }
 0x1d4   : > { %v2466_v52 = vclamps-f32 %v3985_v36, 1.0  ;;  %v1883_v7 = vmul.f32 %v1882_v13, %v3874_v55  ;;  %vm1904_vm12 = vcmp.eq.f32.partialorder %v1903_v35, 8.507059e+37  ;;  %v1906_v6 = vor.u32 1.1754944e-38, %v1905_v29  ;;  %v1013_v29 = vpop.f32.mrf.mxu0 }
 0x1d5   : > { %v1451_v24 = vadd.f32 0.4994258, %v1450_v57  ;;  %v1387_v27 = vsel %vm4174_vm7, %v1386_v16, %v1382_v1  ;;  %v1439_v45 = vmul.f32 %v1438_v53, %v4106_v25  ;;  %v1967_v11 = vadd.f32 0.014752088, %v1966_v8 }
 0x1d6   : > { %v2152_v22 = vmul.f32 %v2127_v56, %v3645_v5  ;;  %v1907_v10 = vsel %vm1904_vm12, %v1906_v6, %v1902_v37  ;;  %v1922_v47 = vadd.f32 1.1283791, %v1921_v23  ;;  %v1400_v63 = vadd.f32 0.18741608, %v1399_v46 }
 0x1d7   : > { %v4224_v62 = vadd.f32 1.0, %v1412_v33  ;;  %v1936_v36 = vsub.f32 1.0, %v1935_v26  ;;  %v1955_v55 = vmul.f32 %v1954_v2, %v4178_v48  ;;  %v1968_v13 = vmul.f32 %v1967_v11, %v4178_v48 }
 0x1d8   : > { %2490 = vmatmul.msk.f32.gmra.mxu3 %vm253_vm0, %v2152_v22  ;;  %v2128_v50 = vadd.f32 1.0, %v2466_v52  ;;  %v4231_v40 = vmul.f32 %v4164_v49, %v4063_v28  ;;  %v4234_v60 = vmul.f32 0.5, %v4072_v15  ;;  %v1452_v5 = vmul.f32 %v1451_v24, %v4106_v25 }
 0x1d9   : > { %v4238_v16 = vmul.f32 0.5, %v4111_v43  ;;  %v4241_v3 = vmul.f32 %v1387_v27, %v4145_v31  ;;  %v4243_v59 = vmul.f32 %v1907_v10, %v1883_v7  ;;  %v1440_v32 = vadd.f32 0.18741608, %v1439_v45  ;;  %v1055_v8 = vpop.f32.mrf.mxu2 }
 0x1da   : > { %v1969_v35 = vadd.f32 0.112945676, %v1968_v13  ;;  %v4246_v57 = vmul.f32 %v1922_v47, %v4009_v21  ;;  %v1943_v28 = vand.u32 2147483647, %v4156_v20  ;;  %v1401_v15 = vmul.f32 %v1400_v63, %v4090_v18 }
 0x1db   : > { %2602 = vrcp.f32 %v4224_v62  ;;  %v1937_v43 = vmul.f32 %v4187_v0, %v1936_v36  ;;  %v1956_v49 = vadd.f32 0.0036580483, %v1955_v55  ;;  %v2153_v17 = vmul.f32 %v2128_v50, %v3654_v58 }
 0x1dc   : > { %v1970_v31 = vmul.f32 %v1969_v35, %v4178_v48  ;;  %v4254_v1 = vadd.f32 1.0, %v1452_v5  ;;  %v4257_v53 = vadd.f32 %v3977_v30, %v1013_v29  ;;  %v4260_v21 = vadd.f32 %v3977_v30, %v1052_v44  ;;  %v1016_v58 = vpop.f32.mrf.mxu0 }
 0x1dd   : > { %v2453_v56 = vclamps-f32 %v4035_v54, 1.0  ;;  %vm1939_vm13 = vweird.f32 %v4156_v20  ;;  %v1945_v18 = vand.u32 2147483648, %v4156_v20  ;;  %v1441_v51 = vmul.f32 %v1440_v32, %v4106_v25 }
 0x1de   : > { %v1971_v23 = vadd.f32 0.4994258, %v1970_v31  ;;  %vm1940_vm14 = vweird.f32 %v4187_v0  ;;  %vm4267_vm15 = vcmp.eq.f32.partialorder %v1943_v28, 8.507059e+37  ;;  %v1402_v46 = vadd.f32 1.1283791, %v1401_v15 }
 0x1df   : > { %v4272_v33 = vmul.f32 0.70710677, %v4257_v53  ;;  %v1938_v54 = vadd.f32 %v4187_v0, %v1937_v43  ;;  %v1425_v37 = vand.u32 2147483648, %v4224_v62  ;;  %v1957_v26 = vmul.f32 %v1956_v49, %v4178_v48  ;;  %vm4296_vm1 = vmor %vm1939_vm13, %vm1940_vm14 }
 0x1e0   : > { %v1972_v25 = vmul.f32 %v1971_v23, %v4178_v48  ;;  %2491 = vmatmul.msk.f32.gmra.mxu3 %vm253_vm0, %v2153_v17  ;;  %2604 = vrcp.f32 %v4254_v1  ;;  %v4285_v7 = vmul.f32 0.70710677, %v4260_v21  ;;  %v2115_v6 = vadd.f32 1.0, %v2453_v56 }
 0x1e1   : > { %v4279_v2 = vpop.eup %2602  ;;  %v1471_v52 = vmul.f32 %v4272_v33, %v4272_v33  ;;  %v1946_v24 = vor.u32 1.1754944e-38, %v1945_v18  ;;  %v1442_v44 = vadd.f32 1.1283791, %v1441_v51  ;;  %v4290_v45 = vadd.f32 %v3977_v30, %v1055_v8 }
 0x1e2   : > { %v4287_v27 = vadd.f32 1.0, %v1972_v25  ;;  %v1991_v10 = vmul.f32 %v4285_v7, %v4285_v7  ;;  %v2140_v47 = vmul.f32 %v2115_v6, %v3704_v14  ;;  %v2454_v63 = vclamps-f32 %v4092_v19, 1.0 }
 0x1e3   : > { %v4300_v22 = vmin.f32 %v1471_v52, 16.0  ;;  %v1942_v36 = vsel %vm4296_vm1, %v4187_v0, %v1938_v54  ;;  %v4310_v55 = vmul.f32 %v1402_v46, %v4069_v42  ;;  %v1958_v20 = vadd.f32 0.05243302, %v1957_v26 }
 0x1e4   : > { %2606 = vrcp.f32 %v4287_v27  ;;  %v1415_v13 = vmul.f32 %v4279_v2, %v4224_v62  ;;  %v1423_v50 = vand.u32 2147483647, %v4224_v62  ;;  %v4316_v5 = vor.u32 1.1754944e-38, %v1425_v37  ;;  %2478 = vmatmul.msk.f32.gmra.mxu1 %vm253_vm0, %v2140_v47 }
 0x1e5   : > { %v1463_v14 = vand.u32 2147483647, %v4254_v1  ;;  %v4321_v19 = vmul.f32 %v1442_v44, %v4085_v9  ;;  %v1473_v42 = vmul.f32 2.1237322e-06, %v4300_v22  ;;  %v1484_v0 = vmul.f32 3.8918573e-05, %v4300_v22 }
 0x1e6   : > { %v4325_v32 = vmin.f32 %v1991_v10, 16.0  ;;  %v4327_v35 = vpop.eup %2604  ;;  %v1947_v29 = vsel %vm4267_vm15, %v1946_v24, %v1942_v36  ;;  %v1465_v28 = vand.u32 2147483648, %v4254_v1  ;;  %v4333_v15 = vmul.f32 0.70710677, %v4290_v45 }
 0x1e7   : > { %v2116_v43 = vadd.f32 1.0, %v2454_v63  ;;  %v1959_v9 = vmul.f32 %v1958_v20, %v4178_v48  ;;  %v1474_v49 = vadd.f32 0.00028619796, %v1473_v42  ;;  %v1485_v31 = vadd.f32 0.001143296, %v1484_v0 }
 0x1e8   : > { %v1993_v17 = vmul.f32 2.1237322e-06, %v4325_v32  ;;  %v1416_v56 = vsub.f32 1.0, %v1415_v13  ;;  %v2004_v18 = vmul.f32 3.8918573e-05, %v4325_v32  ;;  %v2031_v51 = vmul.f32 %v4333_v15, %v4333_v15 }
 0x1e9   : > { %v2141_v23 = vmul.f32 %v2116_v43, %v3801_v61  ;;  %v1455_v8 = vmul.f32 %v4327_v35, %v4254_v1  ;;  %v1475_v54 = vmul.f32 %v1474_v49, %v4300_v22  ;;  %v1486_v37 = vmul.f32 %v1485_v31, %v4300_v22 }
 0x1ea   : > { %v4341_v46 = vpop.eup %2606  ;;  %v1994_v26 = vadd.f32 0.00028619796, %v1993_v17  ;;  %vm1420_vm2 = vweird.f32 %v4279_v2  ;;  %v4348_v25 = vor.u32 1.1754944e-38, %v1465_v28  ;;  %v2005_v52 = vadd.f32 0.001143296, %v2004_v18 }
 0x1eb   : > { %v4350_v6 = vmin.f32 %v2031_v51, 16.0  ;;  %vm1419_vm3 = vweird.f32 %v4224_v62  ;;  %v1476_v61 = vadd.f32 0.0036580483, %v1475_v54  ;;  %v1487_v24 = vadd.f32 0.014752088, %v1486_v37 }
 0x1ec   : > { %v1995_v44 = vmul.f32 %v1994_v26, %v4325_v32  ;;  %v4355_v11 = vadd.f32 %v3977_v30, %v1016_v58  ;;  %v1975_v10 = vmul.f32 %v4341_v46, %v4287_v27  ;;  %v2006_v47 = vmul.f32 %v2005_v52, %v4325_v32  ;;  %2479 = vmatmul.msk.f32.gmra.mxu1 %vm253_vm0, %v2141_v23  ;;  %vm4397_vm7 = vmor %vm1419_vm3, %vm1420_vm2 }
 0x1ed   : > { %v2033_v63 = vmul.f32 2.1237322e-06, %v4350_v6  ;;  %v2044_v36 = vmul.f32 3.8918573e-05, %v4350_v6  ;;  %v1417_v20 = vmul.f32 %v4279_v2, %v1416_v56  ;;  %v1456_v13 = vsub.f32 1.0, %v1455_v8 }
 0x1ee   : > { %v1960_v42 = vadd.f32 0.18741608, %v1959_v9  ;;  %v1488_v0 = vmul.f32 %v1487_v24, %v4300_v22  ;;  %v1477_v28 = vmul.f32 %v1476_v61, %v4300_v22  ;;  %v2007_v43 = vadd.f32 0.014752088, %v2006_v47 }
 0x1ef   : > { %v2034_v49 = vadd.f32 0.00028619796, %v2033_v63  ;;  %v2045_v31 = vadd.f32 0.001143296, %v2044_v36  ;;  %v4367_v17 = vmul.f32 %v1947_v29, %v4246_v57  ;;  %v1996_v51 = vadd.f32 0.0036580483, %v1995_v44 }
 0x1f0   : > { %v1489_v18 = vadd.f32 0.112945676, %v1488_v0  ;;  %v4370_v58 = vmul.f32 0.70710677, %v4355_v11  ;;  %vm1459_vm4 = vweird.f32 %v4254_v1  ;;  %v1976_v56 = vsub.f32 1.0, %v1975_v10 }
 0x1f1   : > { %v2008_v9 = vmul.f32 %v2007_v43, %v4325_v32  ;;  %v2035_v23 = vmul.f32 %v2034_v49, %v4350_v6  ;;  %v2046_v8 = vmul.f32 %v2045_v31, %v4350_v6  ;;  %v1418_v54 = vadd.f32 %v4279_v2, %v1417_v20 }
 0x1f2   : > { %v1961_v37 = vmul.f32 %v1960_v42, %v4178_v48  ;;  %v1490_v57 = vmul.f32 %v1489_v18, %v4300_v22  ;;  %v1511_v29 = vmul.f32 %v4370_v58, %v4370_v58  ;;  %v1457_v26 = vmul.f32 %v4327_v35, %v1456_v13 }
 0x1f3   : > { %v1478_v52 = vadd.f32 0.05243302, %v1477_v28  ;;  %v2009_v61 = vadd.f32 0.112945676, %v2008_v9  ;;  %v2047_v24 = vadd.f32 0.014752088, %v2046_v8  ;;  %vm1460_vm6 = vweird.f32 %v4327_v35 }
 0x1f4   : > { %vm4384_vm5 = vcmp.eq.f32.partialorder %v1423_v50, 8.507059e+37  ;;  %v4390_v48 = vmul.f32 0.5, %v4257_v53  ;;  %v1491_v10 = vadd.f32 0.4994258, %v1490_v57  ;;  %v1997_v47 = vmul.f32 %v1996_v51, %v4325_v32  ;;  %vm4430_vm10 = vmor %vm1459_vm4, %vm1460_vm6 }
 0x1f5   : > { %v1977_v50 = vmul.f32 %v4341_v46, %v1976_v56  ;;  %v2010_v36 = vmul.f32 %v2009_v61, %v4325_v32  ;;  %v2036_v20 = vadd.f32 0.0036580483, %v2035_v23  ;;  %v2048_v13 = vmul.f32 %v2047_v24, %v4350_v6 }
 0x1f6   : > { %v1422_v53 = vsel %vm4397_vm7, %v4279_v2, %v1418_v54  ;;  %vm4409_vm8 = vcmp.eq.f32.partialorder %v1463_v14, 8.507059e+37  ;;  %v1962_v62 = vadd.f32 1.1283791, %v1961_v37  ;;  %v1492_v0 = vmul.f32 %v1491_v10, %v4300_v22 }
 0x1f7   : > { %v4414_v28 = vmin.f32 %v1511_v29, 16.0  ;;  %v1458_v43 = vadd.f32 %v4327_v35, %v1457_v26  ;;  %v1479_v49 = vmul.f32 %v1478_v52, %v4300_v22  ;;  %v2011_v31 = vadd.f32 0.4994258, %v2010_v36 }
 0x1f8   : > { %v2049_v18 = vadd.f32 0.112945676, %v2048_v13  ;;  %vm1980_vm9 = vweird.f32 %v4341_v46  ;;  %v4419_v2 = vadd.f32 1.0, %v1492_v0  ;;  %v1998_v51 = vadd.f32 0.05243302, %v1997_v47  ;;  %v1019_v0 = vpop.f32.mrf.mxu0 }
 0x1f9   : > { %v1513_v14 = vmul.f32 2.1237322e-06, %v4414_v28  ;;  %v1978_v56 = vadd.f32 %v4341_v46, %v1977_v50  ;;  %v2012_v9 = vmul.f32 %v2011_v31, %v4325_v32  ;;  %v2037_v23 = vmul.f32 %v2036_v20, %v4350_v6 }
 0x1fa   : > { %v2050_v8 = vmul.f32 %v2049_v18, %v4350_v6  ;;  %vm1979_vm11 = vweird.f32 %v4287_v27  ;;  %v1983_v37 = vand.u32 2147483647, %v4287_v27  ;;  %v1985_v57 = vand.u32 2147483648, %v4287_v27 }
 0x1fb   : > { %2608 = vrcp.f32 %v4419_v2  ;;  %v1462_v29 = vsel %vm4430_vm10, %v4327_v35, %v1458_v43  ;;  %v1480_v26 = vadd.f32 0.18741608, %v1479_v49  ;;  %v4441_v52 = vadd.f32 1.0, %v2012_v9  ;;  %vm4446_vm12 = vmor %vm1979_vm11, %vm1980_vm9 }
 0x1fc   : > { %v1524_v1 = vmul.f32 3.8918573e-05, %v4414_v28  ;;  %v1999_v24 = vmul.f32 %v1998_v51, %v4325_v32  ;;  %v2051_v27 = vadd.f32 0.4994258, %v2050_v8  ;;  %v1514_v10 = vadd.f32 0.00028619796, %v1513_v14 }
 0x1fd   : > { %v2467_v47 = vclamps-f32 %v4231_v40, 1.0  ;;  %v1427_v35 = vsel %vm4384_vm5, %v4316_v5, %v1422_v53  ;;  %v1982_v63 = vsel %vm4446_vm12, %v4341_v46, %v1978_v56  ;;  %2610 = vrcp.f32 %v4441_v52 }
 0x1fe   : > { %v2038_v50 = vadd.f32 0.05243302, %v2037_v23  ;;  %v1963_v36 = vmul.f32 %v1962_v62, %v4138_v34  ;;  %vm1984_vm13 = vcmp.eq.f32.partialorder %v1983_v37, 8.507059e+37  ;;  %v1986_v20 = vor.u32 1.1754944e-38, %v1985_v57  ;;  %v1058_v37 = vpop.f32.mrf.mxu2 }
 0x1ff   : > { %v2052_v13 = vmul.f32 %v2051_v27, %v4350_v6  ;;  %v1467_v40 = vsel %vm4409_vm8, %v4348_v25, %v1462_v29  ;;  %v1481_v44 = vmul.f32 %v1480_v26, %v4300_v22  ;;  %v1515_v5 = vmul.f32 %v1514_v10, %v4414_v28 }
 0x200   : > { %v1525_v53 = vadd.f32 0.001143296, %v1524_v1  ;;  %v1987_v43 = vsel %vm1984_vm13, %v1986_v20, %v1982_v63  ;;  %v2000_v49 = vadd.f32 0.18741608, %v1999_v24  ;;  %v2129_v34 = vadd.f32 1.0, %v2467_v47 }
 0x201   : > { %v4466_v46 = vpop.eup %2608  ;;  %v4468_v31 = vadd.f32 1.0, %v2052_v13  ;;  %v2039_v18 = vmul.f32 %v2038_v50, %v4350_v6  ;;  %v1516_v42 = vadd.f32 0.0036580483, %v1515_v5  ;;  %v4475_v22 = vmul.f32 %v1427_v35, %v4310_v55 }
 0x202   : > { %v1495_v62 = vmul.f32 %v4466_v46, %v4419_v2  ;;  %v1526_v25 = vmul.f32 %v1525_v53, %v4414_v28  ;;  %v4478_v51 = vmul.f32 %v1467_v40, %v4321_v19  ;;  %v4482_v14 = vadd.f32 %v3977_v30, %v1019_v0 }
 0x203   : > { %2612 = vrcp.f32 %v4468_v31  ;;  %v4484_v56 = vpop.eup %2610  ;;  %v1482_v9 = vadd.f32 1.1283791, %v1481_v44  ;;  %v1517_v8 = vmul.f32 %v1516_v42, %v4414_v28  ;;  %v4487_v57 = vmul.f32 %v1987_v43, %v1963_v36 }
 0x204   : > { %v1496_v23 = vsub.f32 1.0, %v1495_v62  ;;  %v1527_v54 = vadd.f32 0.014752088, %v1526_v25  ;;  %v1505_v55 = vand.u32 2147483648, %v4419_v2  ;;  %v2001_v19 = vmul.f32 %v2000_v49, %v4325_v32 }
 0x205   : > { %v2154_v29 = vmul.f32 %v2129_v34, %v3856_v4  ;;  %v2015_v26 = vmul.f32 %v4484_v56, %v4441_v52  ;;  %v2025_v1 = vand.u32 2147483648, %v4441_v52  ;;  %v2040_v61 = vadd.f32 0.18741608, %v2039_v18 }
 0x206   : > { %v1528_v24 = vmul.f32 %v1527_v54, %v4414_v28  ;;  %v1503_v27 = vand.u32 2147483647, %v4419_v2  ;;  %v1518_v10 = vadd.f32 0.05243302, %v1517_v8  ;;  %v4499_v47 = vmul.f32 0.70710677, %v4482_v14 }
 0x207   : > { %2492 = vmatmul.msk.f32.gmra.mxu3 %vm253_vm0, %v2154_v29  ;;  %v4502_v32 = vadd.f32 %v3977_v30, %v1058_v37  ;;  %v4505_v4 = vmul.f32 %v1482_v9, %v4272_v33  ;;  %v1497_v35 = vmul.f32 %v4466_v46, %v1496_v23  ;;  %vm1499_vm14 = vweird.f32 %v4419_v2 }
 0x208   : > { %v1529_v63 = vadd.f32 0.112945676, %v1528_v24  ;;  %v1506_v36 = vor.u32 1.1754944e-38, %v1505_v55  ;;  %v2002_v20 = vadd.f32 1.1283791, %v2001_v19  ;;  %v1551_v13 = vmul.f32 %v4499_v47, %v4499_v47 }
 0x209   : > { %v4509_v50 = vpop.eup %2612  ;;  %v4514_v40 = vmul.f32 0.70710677, %v4502_v32  ;;  %v2016_v44 = vsub.f32 1.0, %v2015_v26  ;;  %v2023_v5 = vand.u32 2147483647, %v4441_v52  ;;  %v4517_v33 = vor.u32 1.1754944e-38, %v2025_v1 }
 0x20a   : > { %v2041_v53 = vmul.f32 %v2040_v61, %v4350_v6  ;;  %vm1500_vm15 = vweird.f32 %v4466_v46  ;;  %vm4521_vm1 = vcmp.eq.f32.partialorder %v1503_v27, 8.507059e+37  ;;  %v1519_v43 = vmul.f32 %v1518_v10, %v4414_v28 }
 0x20b   : > { %v1530_v49 = vmul.f32 %v1529_v63, %v4414_v28  ;;  %v4527_v34 = vmin.f32 %v1551_v13, 16.0  ;;  %v1498_v62 = vadd.f32 %v4466_v46, %v1497_v35  ;;  %v2055_v18 = vmul.f32 %v4509_v50, %v4468_v31  ;;  %vm4549_vm3 = vmor %vm1499_vm14, %vm1500_vm15 }
 0x20c   : > { %v2071_v6 = vmul.f32 %v4514_v40, %v4514_v40  ;;  %v2455_v42 = vclamps-f32 %v4241_v3, 1.0  ;;  %v4536_v25 = vmul.f32 %v2002_v20, %v4285_v7  ;;  %v2017_v54 = vmul.f32 %v4484_v56, %v2016_v44 }
 0x20d   : > { %v1531_v9 = vadd.f32 0.4994258, %v1530_v49  ;;  %v1553_v23 = vmul.f32 2.1237322e-06, %v4527_v34  ;;  %v1564_v8 = vmul.f32 3.8918573e-05, %v4527_v34  ;;  %vm2019_vm2 = vweird.f32 %v4441_v52 }
 0x20e   : > { %v2042_v37 = vadd.f32 1.1283791, %v2041_v53  ;;  %v4542_v55 = vmin.f32 %v2071_v6, 16.0  ;;  %v2468_v19 = vclamps-f32 %v4243_v59, 1.0  ;;  %v1520_v7 = vadd.f32 0.18741608, %v1519_v43  ;;  %v1022_v6 = vpop.f32.mrf.mxu0 }
 0x20f   : > { %v1532_v29 = vmul.f32 %v1531_v9, %v4414_v28  ;;  %v1554_v26 = vadd.f32 0.00028619796, %v1553_v23  ;;  %v1565_v1 = vadd.f32 0.001143296, %v1564_v8  ;;  %v1502_v61 = vsel %vm4549_vm3, %v4466_v46, %v1498_v62 }
 0x210   : > { %v2056_v24 = vsub.f32 1.0, %v2055_v18  ;;  %v2073_v59 = vmul.f32 2.1237322e-06, %v4542_v55  ;;  %v2084_v27 = vmul.f32 3.8918573e-05, %v4542_v55  ;;  %v2117_v63 = vadd.f32 1.0, %v2455_v42 }
 0x211   : > { %v4559_v10 = vadd.f32 1.0, %v1532_v29  ;;  %v1555_v2 = vmul.f32 %v1554_v26, %v4527_v34  ;;  %v1566_v35 = vmul.f32 %v1565_v1, %v4527_v34  ;;  %v4564_v20 = vmul.f32 %v2042_v37, %v4333_v15 }
 0x212   : > { %v2074_v13 = vadd.f32 0.00028619796, %v2073_v59  ;;  %v2085_v44 = vadd.f32 0.001143296, %v2084_v27  ;;  %v2130_v53 = vadd.f32 1.0, %v2468_v19  ;;  %vm2020_vm4 = vweird.f32 %v4484_v56 }
 0x213   : > { %v2063_v46 = vand.u32 2147483647, %v4468_v31  ;;  %v2065_v43 = vand.u32 2147483648, %v4468_v31  ;;  %2614 = vrcp.f32 %v4559_v10  ;;  %v4572_v49 = vsel %vm4521_vm1, %v1506_v36, %v1502_v61  ;;  %vm4589_vm5 = vmor %vm2019_vm2, %vm2020_vm4 }
 0x214   : > { %v4575_v62 = vadd.f32 %v4484_v56, %v2017_v54  ;;  %v1556_v15 = vadd.f32 0.0036580483, %v1555_v2  ;;  %v1567_v18 = vadd.f32 0.014752088, %v1566_v35  ;;  %v2057_v42 = vmul.f32 %v4509_v50, %v2056_v24 }
 0x215   : > { %v2075_v9 = vmul.f32 %v2074_v13, %v4542_v55  ;;  %v2086_v23 = vmul.f32 %v2085_v44, %v4542_v55  ;;  %v2142_v8 = vmul.f32 %v2117_v63, %v3989_v39  ;;  %v1521_v37 = vmul.f32 %v1520_v7, %v4414_v28 }
 0x216   : > { %v1557_v0 = vmul.f32 %v1556_v15, %v4527_v34  ;;  %v1568_v36 = vmul.f32 %v1567_v18, %v4527_v34  ;;  %v2155_v54 = vmul.f32 %v2130_v53, %v4016_v12  ;;  %vm2060_vm6 = vweird.f32 %v4509_v50 }
 0x217   : > { %v2076_v3 = vadd.f32 0.0036580483, %v2075_v9  ;;  %v2087_v39 = vadd.f32 0.014752088, %v2086_v23  ;;  %2480 = vmatmul.msk.f32.gmra.mxu1 %vm253_vm0, %v2142_v8  ;;  %v4596_v28 = vadd.f32 %v3977_v30, %v1022_v6  ;;  %v2469_v7 = vclamps-f32 %v4367_v17, 1.0 }
 0x218   : > { %v2022_v12 = vsel %vm4589_vm5, %v4484_v56, %v4575_v62  ;;  %vm4605_vm7 = vcmp.eq.f32.partialorder %v2023_v5, 8.507059e+37  ;;  %v1558_v26 = vadd.f32 0.05243302, %v1557_v0  ;;  %v1569_v1 = vadd.f32 0.112945676, %v1568_v36  ;;  %2493 = vmatmul.msk.f32.gmra.mxu3 %vm253_vm0, %v2155_v54 }
 0x219   : > { %v2456_v30 = vclamps-f32 %v4475_v22, 1.0  ;;  %v2615_v61 = vpop.eup %2614  ;;  %v2058_v17 = vadd.f32 %v4509_v50, %v2057_v42  ;;  %vm2059_vm8 = vweird.f32 %v4468_v31  ;;  %v2077_v24 = vmul.f32 %v2076_v3, %v4542_v55 }
 0x21a   : > { %v2088_v56 = vmul.f32 %v2087_v39, %v4542_v55  ;;  %v4616_v52 = vmul.f32 0.70710677, %v4596_v28  ;;  %v1535_v5 = vmul.f32 %v2615_v61, %v4559_v10  ;;  %vm1539_vm9 = vweird.f32 %v4559_v10  ;;  %vm4657_vm12 = vmor %vm2059_vm8, %vm2060_vm6 }
 0x21b   : > { %v1543_v59 = vand.u32 2147483647, %v4559_v10  ;;  %v1570_v22 = vmul.f32 %v1569_v1, %v4527_v34  ;;  %v2078_v27 = vadd.f32 0.05243302, %v2077_v24  ;;  %v2131_v63 = vadd.f32 1.0, %v2469_v7 }
 0x21c   : > { %v2089_v2 = vadd.f32 0.112945676, %v2088_v56  ;;  %v1591_v35 = vmul.f32 %v4616_v52, %v4616_v52  ;;  %v1536_v13 = vsub.f32 1.0, %v1535_v5  ;;  %v1559_v44 = vmul.f32 %v1558_v26, %v4527_v34 }
 0x21d   : > { %v1571_v53 = vadd.f32 0.4994258, %v1570_v22  ;;  %v2118_v62 = vadd.f32 1.0, %v2456_v30  ;;  %v2156_v6 = vmul.f32 %v2131_v63, %v4119_v41  ;;  %v2457_v42 = vclamps-f32 %v4478_v51, 1.0 }
 0x21e   : > { %v2090_v15 = vmul.f32 %v2089_v2, %v4542_v55  ;;  %v4626_v18 = vmin.f32 %v1591_v35, 16.0  ;;  %v1537_v9 = vmul.f32 %v2615_v61, %v1536_v13  ;;  %vm1540_vm10 = vweird.f32 %v2615_v61 }
 0x21f   : > { %v1572_v23 = vmul.f32 %v1571_v53, %v4527_v34  ;;  %v2143_v8 = vmul.f32 %v2118_v62, %v4149_v38  ;;  %v1545_v0 = vand.u32 2147483648, %v4559_v10  ;;  %v2079_v36 = vmul.f32 %v2078_v27, %v4542_v55  ;;  %vm4648_vm11 = vmor %vm1539_vm9, %vm1540_vm10 }
 0x220   : > { %v2091_v54 = vadd.f32 0.4994258, %v2090_v15  ;;  %v1593_v19 = vmul.f32 2.1237322e-06, %v4626_v18  ;;  %v1538_v3 = vadd.f32 %v2615_v61, %v1537_v9  ;;  %v1560_v39 = vadd.f32 0.18741608, %v1559_v44  ;;  %2494 = vmatmul.msk.f32.gmra.mxu3 %vm253_vm0, %v2156_v6 }
 0x221   : > { %v4635_v7 = vadd.f32 1.0, %v1572_v23  ;;  %v1604_v41 = vmul.f32 3.8918573e-05, %v4626_v18  ;;  %2481 = vmatmul.msk.f32.gmra.mxu1 %vm253_vm0, %v2143_v8  ;;  %v2027_v38 = vsel %vm4605_vm7, %v4517_v33, %v2022_v12  ;;  %v2066_v51 = vor.u32 1.1754944e-38, %v2065_v43 }
 0x222   : > { %v2092_v1 = vmul.f32 %v2091_v54, %v4542_v55  ;;  %v2119_v30 = vadd.f32 1.0, %v2457_v42  ;;  %v1522_v33 = vadd.f32 1.1283791, %v1521_v37  ;;  %v1542_v43 = vsel %vm4648_vm11, %v2615_v61, %v1538_v3 }
 0x223   : > { %2616 = vrcp.f32 %v4635_v7  ;;  %v1594_v10 = vadd.f32 0.00028619796, %v1593_v19  ;;  %v1508_v12 = vmul.f32 %v4572_v49, %v4505_v4  ;;  %v2062_v24 = vsel %vm4657_vm12, %v4509_v50, %v2058_v17 }
 0x224   : > { %v1546_v56 = vor.u32 1.1754944e-38, %v1545_v0  ;;  %v2080_v5 = vadd.f32 0.18741608, %v2079_v36  ;;  %vm1544_vm13 = vcmp.eq.f32.partialorder %v1543_v59, 8.507059e+37  ;;  %v1561_v22 = vmul.f32 %v1560_v39, %v4527_v34 }
 0x225   : > { %v4670_v27 = vadd.f32 1.0, %v2092_v1  ;;  %v1605_v37 = vadd.f32 0.001143296, %v1604_v41  ;;  %v2028_v61 = vmul.f32 %v2027_v38, %v4536_v25  ;;  %vm2064_vm14 = vcmp.eq.f32.partialorder %v2063_v46, 8.507059e+37 }
 0x226   : > { %v1547_v2 = vsel %vm1544_vm13, %v1546_v56, %v1542_v43  ;;  %v2144_v4 = vmul.f32 %v2119_v30, %v4234_v60  ;;  %v2067_v49 = vsel %vm2064_vm14, %v2066_v51, %v2062_v24  ;;  %v1523_v35 = vmul.f32 %v1522_v33, %v4370_v58 }
 0x227   : > { %2618 = vrcp.f32 %v4670_v27  ;;  %v1595_v50 = vmul.f32 %v1594_v10, %v4626_v18  ;;  %v2081_v34 = vmul.f32 %v2080_v5, %v4542_v55  ;;  %v1606_v17 = vmul.f32 %v1605_v37, %v4626_v18  ;;  %v4709_v10 = vld [vmem:[%s4817_s4] ss:$0 sm:$0xff] }
 0x228   : > { %v2470_v59 = vclamps-f32 %v4487_v57, 1.0  ;;  %v2458_v25 = vclamps-f32 %v1508_v12, 1.0  ;;  %v1083_v31 = vmul.f32 0.5, %v4260_v21  ;;  %v1071_v46 = vmul.f32 0.5, %v4355_v11  ;;  %v2300_v12 = vpop.f32.mrf.mxu3 }
 0x229   : > { %v2617_v63 = vpop.eup %2616  ;;  %v1548_v60 = vmul.f32 %v1547_v2, %v1523_v35  ;;  %v1562_v13 = vadd.f32 1.1283791, %v1561_v22  ;;  %2482 = vmatmul.msk.f32.gmra.mxu1 %vm253_vm0, %v2144_v4  ;;  %v2068_v58 = vmul.f32 %v2067_v49, %v4564_v20  ;;  %v1583_v55 = vand.u32 2147483647, %v4635_v7 }
 0x22a   : > { %v1575_v44 = vmul.f32 %v2617_v63, %v4635_v7  ;;  %v1607_v53 = vadd.f32 0.014752088, %v1606_v17  ;;  %v1596_v62 = vadd.f32 0.0036580483, %v1595_v50  ;;  %v2132_v15 = vadd.f32 1.0, %v2470_v59 }
 0x22b   : > { %v2120_v57 = vadd.f32 1.0, %v2458_v25  ;;  %v2471_v6 = vclamps-f32 %v2028_v61, 1.0  ;;  %v1585_v21 = vand.u32 2147483648, %v4635_v7  ;;  %v2082_v9 = vadd.f32 1.1283791, %v2081_v34 }
 0x22c   : > { %v1576_v42 = vsub.f32 1.0, %v1575_v44  ;;  %v1608_v11 = vmul.f32 %v1607_v53, %v4626_v18  ;;  %v1563_v8 = vmul.f32 %v1562_v13, %v4499_v47  ;;  %v2157_v20 = vmul.f32 %v2132_v15, %v4238_v16 }
 0x22d   : > { %v2619_v23 = vpop.eup %2618  ;;  %v2145_v0 = vmul.f32 %v2120_v57, %v4390_v48  ;;  %v2459_v36 = vclamps-f32 %v1548_v60, 1.0  ;;  %vm1579_vm15 = vweird.f32 %v4635_v7  ;;  %vm1580_vm1 = vweird.f32 %v2617_v63 }
 0x22e   : > { %v1577_v54 = vmul.f32 %v2617_v63, %v1576_v42  ;;  %v2095_v19 = vmul.f32 %v2619_v23, %v4670_v27  ;;  %vm4695_vm2 = vcmp.eq.f32.partialorder %v1583_v55, 8.507059e+37  ;;  %v1597_v39 = vmul.f32 %v1596_v62, %v4626_v18  ;;  %2495 = vmatmul.msk.f32.gmra.mxu3 %vm253_vm0, %v2157_v20  ;;  %vm1581_vm3 = vmor %vm1579_vm15, %vm1580_vm1 }
 0x22f   : > { %v1609_v41 = vadd.f32 0.112945676, %v1608_v11  ;;  %v2133_v47 = vadd.f32 1.0, %v2471_v6  ;;  %v1586_v38 = vor.u32 1.1754944e-38, %v1585_v21  ;;  %v2083_v48 = vmul.f32 %v2082_v9, %v4514_v40  ;;  %v2261_v40 = vpop.f32.mrf.mxu1 }
 0x230   : > { %v1578_v16 = vadd.f32 %v2617_v63, %v1577_v54  ;;  %v2096_v51 = vsub.f32 1.0, %v2095_v19  ;;  %v2103_v7 = vand.u32 2147483647, %v4670_v27  ;;  %v2105_v26 = vand.u32 2147483648, %v4670_v27 }
 0x231   : > { %v1610_v1 = vmul.f32 %v1609_v41, %v4626_v18  ;;  %2483 = vmatmul.msk.f32.gmra.mxu1 %vm253_vm0, %v2145_v0  ;;  %v2121_v30 = vadd.f32 1.0, %v2459_v36  ;;  %vm2100_vm4 = vweird.f32 %v2619_v23  ;;  %v2472_v43 = vclamps-f32 %v2068_v58, 1.0  ;;  %v2303_v55 = vpop.f32.mrf.mxu3 }
 0x232   : > { %v1582_v29 = vsel %vm1581_vm3, %v2617_v63, %v1578_v16  ;;  %v2097_v33 = vmul.f32 %v2619_v23, %v2096_v51  ;;  %v1598_v56 = vadd.f32 0.05243302, %v1597_v39  ;;  %v2158_v22 = vmul.f32 %v2133_v47, %v1083_v31 }
 0x233   : > { %v1587_v24 = vsel %vm4695_vm2, %v1586_v38, %v1582_v29  ;;  %v1611_v5 = vadd.f32 0.4994258, %v1610_v1  ;;  %vm2099_vm5 = vweird.f32 %v4670_v27  ;;  %v2262_v2 = vadd.f32 %v4709_v10, %v2261_v40 }
 0x234   : > { %v1588_v37 = vmul.f32 %v1587_v24, %v1563_v8  ;;  %v2098_v61 = vadd.f32 %v2619_v23, %v2097_v33  ;;  %vm2101_vm6 = vmor %vm2099_vm5, %vm2100_vm4  ;;  %v2106_v4 = vor.u32 1.1754944e-38, %v2105_v26  ;;  %v2146_v35 = vmul.f32 %v2121_v30, %v1071_v46 }
 0x235   : > { %v1612_v49 = vmul.f32 %v1611_v5, %v4626_v18  ;;  %v2301_v50 = vadd.f32 %v4709_v10, %v2300_v12  ;;  %vm2104_vm7 = vcmp.eq.f32.partialorder %v2103_v7, 8.507059e+37  ;;  %v2134_v17 = vadd.f32 1.0, %v2472_v43  ;;  %2336 = vst.msk [vmem:[%s4716_s27] sm:$0xff] %vm253_vm0, %v2262_v2 }
 0x236   : > { %v2102_v34 = vsel %vm2101_vm6, %v2619_v23, %v2098_v61  ;;  %v2460_v59 = vclamps-f32 %v1588_v37, 1.0  ;;  %v1599_v63 = vmul.f32 %v1598_v56, %v4626_v18  ;;  %2496 = vmatmul.msk.f32.gmra.mxu3 %vm253_vm0, %v2158_v22  ;;  %v1084_v31 = vmul.f32 0.5, %v4290_v45 }
 0x237   : > { %v2107_v25 = vsel %vm2104_vm7, %v2106_v4, %v2102_v34  ;;  %v1613_v27 = vadd.f32 1.0, %v1612_v49  ;;  %2349 = vst.msk [vmem:[%s4716_s27 + $0x68] sm:$0xff] %vm253_vm0, %v2301_v50  ;;  %v1072_v13 = vmul.f32 0.5, %v4482_v14  ;;  %v2264_v44 = vpop.f32.mrf.mxu1  ;;  %v2304_v57 = vadd.f32 %v4709_v10, %v2303_v55 }
 0x238   : > { %v2108_v46 = vmul.f32 %v2107_v25, %v2083_v48  ;;  %v2122_v60 = vadd.f32 1.0, %v2460_v59  ;;  %v2159_v58 = vmul.f32 %v2134_v17, %v1084_v31  ;;  %v1600_v53 = vadd.f32 0.18741608, %v1599_v63 }
 0x239   : > { %2620 = vrcp.f32 %v1613_v27  ;;  %2484 = vmatmul.msk.f32.gmra.mxu1 %vm253_vm0, %v2146_v35  ;;  %v2265_v15 = vadd.f32 %v4709_v10, %v2264_v44  ;;  %2350 = vst.msk [vmem:[%s4716_s27 + $0x70] sm:$0xff] %vm253_vm0, %v2304_v57  ;;  %v1085_v9 = vmul.f32 0.5, %v4502_v32  ;;  %v1625_v20 = vand.u32 2147483648, %v1613_v27 }
 0x23a   : > { %v2473_v62 = vclamps-f32 %v2108_v46, 1.0  ;;  %v2147_v6 = vmul.f32 %v2122_v60, %v1072_v13  ;;  %v1601_v42 = vmul.f32 %v1600_v53, %v4626_v18  ;;  %v1623_v18 = vand.u32 2147483647, %v1613_v27 }
 0x23b   : > { %2337 = vst.msk [vmem:[%s4716_s27 + $0x8] sm:$0xff] %vm253_vm0, %v2265_v15  ;;  %vm1619_vm9 = vweird.f32 %v1613_v27  ;;  %v1626_v32 = vor.u32 1.1754944e-38, %v1625_v20  ;;  %v1073_v51 = vmul.f32 0.5, %v4596_v28 }
 0x23c   : > { %v2135_v14 = vadd.f32 1.0, %v2473_v62  ;;  %v1602_v8 = vadd.f32 1.1283791, %v1601_v42  ;;  %vm1624_vm11 = vcmp.eq.f32.partialorder %v1623_v18, 8.507059e+37 }
 0x23e   : > { %2497 = vmatmul.msk.f32.gmra.mxu3 %vm253_vm0, %v2159_v58  ;;  %v2160_v0 = vmul.f32 %v2135_v14, %v1085_v9  ;;  %v1603_v41 = vmul.f32 %v1602_v8, %v4616_v52 }
 0x23f   : > { %v2621_v45 = vpop.eup %2620  ;;  %v2267_v23 = vpop.f32.mrf.mxu1 }
 0x240   : > { %v1615_v21 = vmul.f32 %v2621_v45, %v1613_v27  ;;  %v2268_v36 = vadd.f32 %v4709_v10, %v2267_v23  ;;  %v2306_v54 = vpop.f32.mrf.mxu3  ;;  %vm1620_vm8 = vweird.f32 %v2621_v45 }
 0x241   : > { %2485 = vmatmul.msk.f32.gmra.mxu1 %vm253_vm0, %v2147_v6  ;;  %v2307_v3 = vadd.f32 %v4709_v10, %v2306_v54  ;;  %vm1621_vm10 = vmor %vm1619_vm9, %vm1620_vm8 }
 0x242   : > { %v1616_v11 = vsub.f32 1.0, %v1615_v21  ;;  %2338 = vst.msk [vmem:[%s4716_s27 + $0x10] sm:$0xff] %vm253_vm0, %v2268_v36 }
 0x243   : > { %2351 = vst.msk [vmem:[%s4716_s27 + $0x78] sm:$0xff] %vm253_vm0, %v2307_v3 }
 0x244   : > { %v1617_v19 = vmul.f32 %v2621_v45, %v1616_v11 }
 0x246   : > { %v1618_v39 = vadd.f32 %v2621_v45, %v1617_v19  ;;  %2498 = vmatmul.msk.f32.gmra.mxu3 %vm253_vm0, %v2160_v0 }
 0x248   : > { %v1622_v47 = vsel %vm1621_vm10, %v2621_v45, %v1618_v39 }
 0x249   : > { %v1627_v16 = vsel %vm1624_vm11, %v1626_v32, %v1622_v47 }
 0x24a   : > { %v1628_v38 = vmul.f32 %v1627_v16, %v1603_v41 }
 0x24c   : > { %v2461_v48 = vclamps-f32 %v1628_v38, 1.0 }
 0x24e   : > { %v2123_v7 = vadd.f32 1.0, %v2461_v48  ;;  %v2270_v1 = vpop.f32.mrf.mxu1 }
 0x24f   : > { %v2271_v30 = vadd.f32 %v4709_v10, %v2270_v1 }
 0x250   : > { %v2148_v26 = vmul.f32 %v2123_v7, %v1073_v51 }
 0x251   : > { %2339 = vst.msk [vmem:[%s4716_s27 + $0x18] sm:$0xff] %vm253_vm0, %v2271_v30 }
 0x252   : > { %2486 = vmatmul.msk.f32.gmra.mxu1 %vm253_vm0, %v2148_v26 }
 0x25b   : > { %v2309_v52 = vpop.f32.mrf.mxu3 }
 0x25c   : > { %v2310_v29 = vadd.f32 %v4709_v10, %v2309_v52 }
 0x25e   : > { %2352 = vst.msk [vmem:[%s4716_s27 + $0x80] sm:$0xff] %vm253_vm0, %v2310_v29 }
 0x261   : > { %v2273_v33 = vpop.f32.mrf.mxu1 }
 0x262   : > { %v2274_v28 = vadd.f32 %v4709_v10, %v2273_v33 }
 0x263   : > { %v2312_v43 = vpop.f32.mrf.mxu3 }
 0x264   : > { %v2313_v40 = vadd.f32 %v4709_v10, %v2312_v43  ;;  %2340 = vst.msk [vmem:[%s4716_s27 + $0x20] sm:$0xff] %vm253_vm0, %v2274_v28 }
 0x266   : > { %2353 = vst.msk [vmem:[%s4716_s27 + $0x88] sm:$0xff] %vm253_vm0, %v2313_v40 }
 0x269   : > { %v2276_v12 = vpop.f32.mrf.mxu1 }
 0x26a   : > { %v2277_v24 = vadd.f32 %v4709_v10, %v2276_v12 }
 0x26c   : > { %2341 = vst.msk [vmem:[%s4716_s27 + $0x28] sm:$0xff] %vm253_vm0, %v2277_v24 }
 0x28a   : > { %v2315_v56 = vpop.f32.mrf.mxu3 }
 0x28b   : > { %v2316_v5 = vadd.f32 %v4709_v10, %v2315_v56 }
 0x28d   : > { %2354 = vst.msk [vmem:[%s4716_s27 + $0x90] sm:$0xff] %vm253_vm0, %v2316_v5 }
 0x294   : > { %v2279_v22 = vpop.f32.mrf.mxu1 }
 0x295   : > { %v2280_v37 = vadd.f32 %v4709_v10, %v2279_v22 }
 0x297   : > { %2342 = vst.msk [vmem:[%s4716_s27 + $0x30] sm:$0xff] %vm253_vm0, %v2280_v37 }
 0x29b   : > { %v2318_v61 = vpop.f32.mrf.mxu3 }
 0x29c   : > { %v2319_v2 = vadd.f32 %v4709_v10, %v2318_v61 }
 0x29e   : > { %v2282_v4 = vpop.f32.mrf.mxu1  ;;  %2355 = vst.msk [vmem:[%s4716_s27 + $0x98] sm:$0xff] %vm253_vm0, %v2319_v2 }
 0x29f   : > { %v2283_v49 = vadd.f32 %v4709_v10, %v2282_v4 }
 0x2a1   : > { %2343 = vst.msk [vmem:[%s4716_s27 + $0x38] sm:$0xff] %vm253_vm0, %v2283_v49 }
 0x2a3   : > { %v2321_v35 = vpop.f32.mrf.mxu3 }
 0x2a4   : > { %v2322_v50 = vadd.f32 %v4709_v10, %v2321_v35 }
 0x2a6   : > { %v2285_v34 = vpop.f32.mrf.mxu1  ;;  %2356 = vst.msk [vmem:[%s4716_s27 + $0xa0] sm:$0xff] %vm253_vm0, %v2322_v50 }
 0x2a7   : > { %v2286_v17 = vadd.f32 %v4709_v10, %v2285_v34 }
 0x2a9   : > { %2344 = vst.msk [vmem:[%s4716_s27 + $0x40] sm:$0xff] %vm253_vm0, %v2286_v17 }
 0x2ae   : > { %v2288_v59 = vpop.f32.mrf.mxu1 }
 0x2af   : > { %v2289_v25 = vadd.f32 %v4709_v10, %v2288_v59 }
 0x2b1   : > { %2345 = vst.msk [vmem:[%s4716_s27 + $0x48] sm:$0xff] %vm253_vm0, %v2289_v25  ;;  %v2324_v63 = vpop.f32.mrf.mxu3 }
 0x2b2   : > { %v2325_v27 = vadd.f32 %v4709_v10, %v2324_v63 }
 0x2b4   : > { %2357 = vst.msk [vmem:[%s4716_s27 + $0xa8] sm:$0xff] %vm253_vm0, %v2325_v27 }
 0x2b6   : > { %v2291_v31 = vpop.f32.mrf.mxu1 }
 0x2b7   : > { %v2292_v46 = vadd.f32 %v4709_v10, %v2291_v31 }
 0x2b9   : > { %2346 = vst.msk [vmem:[%s4716_s27 + $0x50] sm:$0xff] %vm253_vm0, %v2292_v46  ;;  %v2327_v60 = vpop.f32.mrf.mxu3 }
 0x2ba   : > { %v2328_v13 = vadd.f32 %v4709_v10, %v2327_v60 }
 0x2bc   : > { %2358 = vst.msk [vmem:[%s4716_s27 + $0xb0] sm:$0xff] %vm253_vm0, %v2328_v13 }
 0x2be   : > { %v2294_v58 = vpop.f32.mrf.mxu1 }
 0x2bf   : > { %v2295_v44 = vadd.f32 %v4709_v10, %v2294_v58 }
 0x2c1   : > { %2347 = vst.msk [vmem:[%s4716_s27 + $0x58] sm:$0xff] %vm253_vm0, %v2295_v44  ;;  %v2330_v55 = vpop.f32.mrf.mxu3 }
 0x2c2   : > { %v2331_v53 = vadd.f32 %v4709_v10, %v2330_v55 }
 0x2c4   : > { %2359 = vst.msk [vmem:[%s4716_s27 + $0xb8] sm:$0xff] %vm253_vm0, %v2331_v53 }
 0x2c9   : > { %v2333_v62 = vpop.f32.mrf.mxu3 }
 0x2ca   : > { %v2334_v15 = vadd.f32 %v4709_v10, %v2333_v62 }
 0x2cc   : > { %2360 = vst.msk [vmem:[%s4716_s27 + $0xc0] sm:$0xff] %vm253_vm0, %v2334_v15 }
 0x2cf   : > { %v2297_v57 = vpop.f32.mrf.mxu1 }
 0x2d0   : > { %v2298_v6 = vadd.f32 %v4709_v10, %v2297_v57 }
 0x2d2   : > { %2348 = vst.msk [vmem:[%s4716_s27 + $0x60] sm:$0xff] %vm253_vm0, %v2298_v6 }
 0x2d3 PF: > { %s15_s18 = sadd.s32 1, %s2636_s18  }
 0x2d4   : > { %p12_p4 = scmp.ge.s32.totalorder %s15_s18, 4  }
 0x2d6   :  { %14 = sbr.rel (!%p12_p4) target bundleno = 1 (0x1), region = 70 }

</bundles_post_ra>
